<compile_context>
chip_gen: v7x
topology: tpu7x:2x2x1
jax: 0.10.0
libtpu: 0.0.40
codegen_flags: <defaults>
</compile_context>

<pallas_src>
import math
import jax
import jax.numpy as jnp
from jax.experimental import pallas as pl
from jax.experimental.pallas import tpu as pltpu


def make_mab_kernel(bt, n_heads, d_k, d_v, C, inv_scale, compute_dtype):
    cd = compute_dtype

    def mab_kernel(q_ref, k_ref, v_ref, mask_ref,
                   wq_ref, bq_ref, wk_ref, bk_ref, wv_ref, bv_ref,
                   wo_ref, bo_ref,
                   out_ref, attn_ref, acc_ref):
        # q_ref: (bt, Lq, D)   k_ref/v_ref: (bt, Lk, D)   mask_ref: (bt, 1, Lk) int32
        # wq_ref/wk_ref: (1, D, d_k)  wv_ref: (1, D, d_v)  wo_ref: (1, d_v, D)
        # bq_ref/bk_ref: (1, 1, d_k)  bv_ref: (1, 1, d_v)  bo_ref: (1, 1, D)
        # out_ref: (bt, Lq, D)  attn_ref: (bt, 1, Lq, Lk)  acc_ref: (bt, Lq, D) f32
        h = pl.program_id(1)
        lq = q_ref.shape[1]
        lk = k_ref.shape[1]
        d_model = q_ref.shape[2]

        @pl.when(h == 0)
        def _init():
            acc_ref[...] = jnp.zeros_like(acc_ref)

        # Flatten batch*seq so each projection is one (M, K) x (K, N) MXU call with
        # M = bt*L rows (bt is sized so M approaches the MXU tile height).
        q2d = q_ref[...].reshape(bt * lq, d_model).astype(cd)
        k2d = k_ref[...].reshape(bt * lk, d_model).astype(cd)
        v2d = v_ref[...].reshape(bt * lk, d_model).astype(cd)

        # This head's weights, already sliced by the BlockSpec DMA (no lane slicing).
        wq = wq_ref[0].astype(cd)                       # (D, d_k)
        wk = wk_ref[0].astype(cd)                       # (D, d_k)
        wv = wv_ref[0].astype(cd)                       # (D, d_v)

        q_p = jnp.dot(q2d, wq, preferred_element_type=jnp.float32) + bq_ref[0]
        k_p = jnp.dot(k2d, wk, preferred_element_type=jnp.float32) + bk_ref[0]
        v_p = jnp.dot(v2d, wv, preferred_element_type=jnp.float32) + bv_ref[0]

        qh = q_p.reshape(bt, lq, d_k)                   # leading-dim splits (free)
        kh = k_p.reshape(bt, lk, d_k)
        vh = v_p.reshape(bt, lk, d_v)

        # Batched contraction over d_k (no explicit K transpose) and a multiply by
        # the precomputed 1/sqrt(d_k) instead of a per-element divide.
        scores = jnp.einsum('bqd,bkd->bqk', qh.astype(cd), kh.astype(cd),
                            preferred_element_type=jnp.float32) * inv_scale
        scores = jnp.tanh(scores) * C

        # Single mask compare; broadcast over the query axis inside the where.
        mask_b = mask_ref[...] != 0                     # (bt, 1, lk)
        scores = jnp.where(mask_b, jnp.float32(-10.0), scores)

        # Numerically stable log_softmax along the key axis.
        m = jnp.max(scores, axis=-1, keepdims=True)
        lse = jnp.log(jnp.sum(jnp.exp(scores - m), axis=-1, keepdims=True)) + m
        attn = scores - lse                             # (bt, lq, lk)

        # Single full-block store of this head's attention map; the head offset is
        # handled by the output BlockSpec (no stack / partial lane stores in-kernel).
        attn_ref[...] = attn.reshape(bt, 1, lq, lk).astype(attn_ref.dtype)

        # Attention-weighted values for this head.
        out_h = jnp.einsum('bqk,bkd->bqd', attn.astype(cd), vh.astype(cd),
                           preferred_element_type=jnp.float32)   # (bt, lq, d_v)

        # Output projection: accumulate this head's W_o slice.  The sum over heads
        # is mathematically identical to concat(heads) @ W_o.
        contrib = jnp.dot(out_h.reshape(bt * lq, d_v).astype(cd),
                          wo_ref[0].astype(cd),
                          preferred_element_type=jnp.float32)    # (bt*lq, D)
        acc_ref[...] += contrib.reshape(bt, lq, d_model)

        @pl.when(h == n_heads - 1)
        def _finalize():
            out_ref[...] = (acc_ref[...] + bo_ref[...]).astype(out_ref.dtype)

    return mab_kernel


def _pick_block_b(B, Lq, Lk, D, d_k, d_v, budget_bytes):
    """Largest batch block whose per-step working set fits the VMEM budget,
    targeting >=256 projection rows and preferring a divisor of B (so padded tail
    blocks never run on garbage rows)."""
    f32 = 4

    def step_bytes(bt):
        qkv_in = bt * (Lq + 2 * Lk) * D * f32            # Q, K, V input blocks
        mask_in = bt * Lk * f32
        out_blk = bt * Lq * D * f32
        attn_blk = bt * Lq * Lk * f32                    # one head per grid step
        weights = (2 * D * d_k + 2 * d_v * D + 2 * d_k + d_v + D) * f32
        live = bt * (Lq * d_k + Lk * (d_k + d_v)
                     + 3 * Lq * Lk + Lq * d_v + 2 * Lq * D) * f32
        # inputs/outputs/weights are double-buffered by the pipeline
        return 2 * (qkv_in + mask_in + out_blk + attn_blk + weights) + live

    target_rows = 256                                    # one full MXU pass (v6e/v7x)
    bt = min(B, max(1, -(-target_rows // max(Lq, 1))))
    while bt > 1 and step_bytes(bt) > budget_bytes:
        bt -= 1
    while bt > 1 and B % bt != 0:
        bt -= 1
    return bt


def mab_forward(Q, K, V, mask, params, n_heads, d_k, d_v, C=10.0,
                block_b=None, compute_dtype=jnp.float32):
    """Q: [B, Lq, D], K/V: [B, Lk, D], mask: [B, Lk] int (1 = masked)."""
    B, Lq, D = Q.shape
    Lk = K.shape[1]
    inv_scale = 1.0 / math.sqrt(d_k)

    wq, bq, wk, bk, wv, bv, wo, bo = params

    # Head-major weight layout: the per-head slice becomes a leading-dim BlockSpec
    # index (DMA-level slicing) instead of sub-128-lane slicing inside the kernel.
    wq3 = wq.reshape(D, n_heads, d_k).transpose(1, 0, 2)          # (H, D, d_k)
    wk3 = wk.reshape(D, n_heads, d_k).transpose(1, 0, 2)          # (H, D, d_k)
    wv3 = wv.reshape(D, n_heads, d_v).transpose(1, 0, 2)          # (H, D, d_v)
    wo3 = wo.reshape(n_heads, d_v, D)                             # (H, d_v, D)
    bq3 = bq.reshape(n_heads, 1, d_k)
    bk3 = bk.reshape(n_heads, 1, d_k)
    bv3 = bv.reshape(n_heads, 1, d_v)
    bo3 = bo.reshape(1, 1, D)

    # Mask as (B, 1, Lk) so the batch-blocked BlockSpec keeps full-extent minor dims.
    mask3 = mask.reshape(B, 1, Lk).astype(jnp.int32)

    # --- VMEM budget & batch-block selection (v7x 64 MiB vs v5e/v6e 128 MiB) ----
    try:
        vmem_cap = int(pltpu.get_tpu_info().vmem_capacity_bytes)
    except Exception:
        vmem_cap = 64 * 1024 * 1024          # conservative default (v7x per-core VMEM)
    vmem_limit = min(int(0.75 * vmem_cap), 96 * 1024 * 1024)
    if block_b is None:
        block_b = _pick_block_b(B, Lq, Lk, D, d_k, d_v, int(0.8 * vmem_limit))
    bt = max(1, min(block_b, B))
    grid = (pl.cdiv(B, bt), n_heads)         # head axis innermost = W_o reduction axis

    kernel = make_mab_kernel(bt, n_heads, d_k, d_v, C, inv_scale, compute_dtype)

    out, attn = pl.pallas_call(
        kernel,
        out_shape=(
            jax.ShapeDtypeStruct((B, Lq, D), jnp.float32),
            jax.ShapeDtypeStruct((B, n_heads, Lq, Lk), jnp.float32),
        ),
        grid_spec=pltpu.PrefetchScalarGridSpec(
            num_scalar_prefetch=0,
            grid=grid,
            in_specs=[
                pl.BlockSpec((bt, Lq, D), lambda b, h: (b, 0, 0)),     # Q  (h-invariant)
                pl.BlockSpec((bt, Lk, D), lambda b, h: (b, 0, 0)),     # K  (h-invariant)
                pl.BlockSpec((bt, Lk, D), lambda b, h: (b, 0, 0)),     # V  (h-invariant)
                pl.BlockSpec((bt, 1, Lk), lambda b, h: (b, 0, 0)),     # mask
                pl.BlockSpec((1, D, d_k), lambda b, h: (h, 0, 0)),     # W_q[h]
                pl.BlockSpec((1, 1, d_k), lambda b, h: (h, 0, 0)),     # b_q[h]
                pl.BlockSpec((1, D, d_k), lambda b, h: (h, 0, 0)),     # W_k[h]
                pl.BlockSpec((1, 1, d_k), lambda b, h: (h, 0, 0)),     # b_k[h]
                pl.BlockSpec((1, D, d_v), lambda b, h: (h, 0, 0)),     # W_v[h]
                pl.BlockSpec((1, 1, d_v), lambda b, h: (h, 0, 0)),     # b_v[h]
                pl.BlockSpec((1, d_v, D), lambda b, h: (h, 0, 0)),     # W_o[h]
                pl.BlockSpec((1, 1, D), lambda b, h: (0, 0, 0)),       # b_o
            ],
            out_specs=[
                pl.BlockSpec((bt, Lq, D), lambda b, h: (b, 0, 0)),        # out (acc over h)
                pl.BlockSpec((bt, 1, Lq, Lk), lambda b, h: (b, h, 0, 0)),  # attn[:, h]
            ],
            scratch_shapes=[pltpu.VMEM((bt, Lq, D), jnp.float32)],
        ),
        compiler_params=pltpu.CompilerParams(
            # Batch blocks are independent; head axis accumulates into `out`.
            dimension_semantics=("parallel", "arbitrary"),
            vmem_limit_bytes=vmem_limit,
        ),
    )(Q, K, V, mask3, wq3, bq3, wk3, bk3, wv3, bv3, wo3, bo3)

    if Lq == 1:
        out = out[:, 0, :]          # squeeze(1)
        attn = attn[:, :, 0, :]     # squeeze(2)
    return out, attn


def mab_reference(Q, K, V, mask, params, n_heads, d_k, d_v, C=10.0):
    """Pure-JAX reference mirroring the PyTorch forward."""
    wq, bq, wk, bk, wv, bv, wo, bo = params
    B, Lq, D = Q.shape
    Lk = K.shape[1]
    scale = math.sqrt(d_k)
    Qp = (Q @ wq + bq).reshape(B, Lq, n_heads, d_k).transpose(0, 2, 1, 3)
    Kp = (K @ wk + bk).reshape(B, Lk, n_heads, d_k).transpose(0, 2, 1, 3)
    Vp = (V @ wv + bv).reshape(B, Lk, n_heads, d_v).transpose(0, 2, 1, 3)
    scores = jnp.einsum('bhqd,bhkd->bhqk', Qp, Kp) / scale
    scores = jnp.tanh(scores) * C
    m = mask[:, None, None, :].astype(bool)
    scores = jnp.where(jnp.broadcast_to(m, scores.shape), -10.0, scores)
    attn = jax.nn.log_softmax(scores, axis=-1)
    out = jnp.einsum('bhqk,bhkd->bhqd', attn, Vp)
    out = out.transpose(0, 2, 1, 3).reshape(B, Lq, n_heads * d_v)
    out = out @ wo + bo
    if Lq == 1:
        out = out[:, 0, :]
        attn = attn[:, :, 0, :]
    return out, attn


if __name__ == "__main__":
    # Small shapes consistent with the module's forward (Lq=1 query, Lk keys).
    B, Lq, Lk = 8, 1, 8
    d_model, n_heads, d_k, d_v = 32, 2, 8, 8

    key = jax.random.PRNGKey(0)
    ks = jax.random.split(key, 12)

    Q = jax.random.normal(ks[0], (B, Lq, d_model), dtype=jnp.float32)
    K = jax.random.normal(ks[1], (B, Lk, d_model), dtype=jnp.float32)
    V = jax.random.normal(ks[2], (B, Lk, d_model), dtype=jnp.float32)
    # mask: 1 = masked (ignored); keep first key always visible.
    mask = (jax.random.uniform(ks[3], (B, Lk)) < 0.3).astype(jnp.int32)
    mask = mask.at[:, 0].set(0)

    def linear_params(kw, kb, fan_in, fan_out):
        bound = 1.0 / math.sqrt(fan_in)
        # stored as [in, out] (transposed vs torch.nn.Linear's [out, in])
        w = jax.random.uniform(kw, (fan_in, fan_out), minval=-bound, maxval=bound)
        b = jax.random.uniform(kb, (fan_out,), minval=-bound, maxval=bound)
        return w.astype(jnp.float32), b.astype(jnp.float32)

    wq, bq = linear_params(ks[4], ks[5], d_model, n_heads * d_k)
    wk, bk = linear_params(ks[6], ks[7], d_model, n_heads * d_k)
    wv, bv = linear_params(ks[8], ks[9], d_model, n_heads * d_v)
    wo, bo = linear_params(ks[10], ks[11], n_heads * d_v, d_model)
    params = (wq, bq, wk, bk, wv, bv, wo, bo)

    out, attn = mab_forward(Q, K, V, mask, params, n_heads, d_k, d_v)
    jax.block_until_ready((out, attn))

    out_r, attn_r = mab_reference(Q, K, V, mask, params, n_heads, d_k, d_v)
    assert jnp.allclose(out, out_r, atol=1e-4, rtol=1e-4), "output mismatch"
    assert jnp.allclose(attn, attn_r, atol=1e-4, rtol=1e-4), "attn mismatch"

    print("KERNEL_OK")
</pallas_src>

<mosaic_0001>
module attributes {stable_mosaic.version = 11 : i64} {
  func.func @mab_kernel(%arg0: i32, %arg1: i32, %arg2: memref<8x1x32xf32, #tpu.memory_space<vmem>>, %arg3: memref<8x8x32xf32, #tpu.memory_space<vmem>>, %arg4: memref<8x8x32xf32, #tpu.memory_space<vmem>>, %arg5: memref<8x1x8xi32, #tpu.memory_space<vmem>>, %arg6: memref<1x32x8xf32, #tpu.memory_space<vmem>>, %arg7: memref<1x1x8xf32, #tpu.memory_space<vmem>>, %arg8: memref<1x32x8xf32, #tpu.memory_space<vmem>>, %arg9: memref<1x1x8xf32, #tpu.memory_space<vmem>>, %arg10: memref<1x32x8xf32, #tpu.memory_space<vmem>>, %arg11: memref<1x1x8xf32, #tpu.memory_space<vmem>>, %arg12: memref<1x8x32xf32, #tpu.memory_space<vmem>>, %arg13: memref<1x1x32xf32, #tpu.memory_space<vmem>>, %arg14: memref<8x1x32xf32, #tpu.memory_space<vmem>>, %arg15: memref<8x1x1x8xf32, #tpu.memory_space<vmem>>, %arg16: memref<8x1x32xf32, #tpu.memory_space<vmem>>) attributes {dimension_semantics = [#tpu.dimension_semantics<parallel>, #tpu.dimension_semantics<arbitrary>], iteration_bounds = array<i64: 1, 2>, scalar_prefetch = 0 : i64, scratch_operands = 1 : i64, tpu.core_type = #tpu.core_type<tc>, window_params = [{transform_indices = @transform_0, window_bounds = array<i64: 8, 1, 32>}, {transform_indices = @transform_1, window_bounds = array<i64: 8, 8, 32>}, {transform_indices = @transform_2, window_bounds = array<i64: 8, 8, 32>}, {transform_indices = @transform_3, window_bounds = array<i64: 8, 1, 8>}, {transform_indices = @transform_4, window_bounds = array<i64: 1, 32, 8>}, {transform_indices = @transform_5, window_bounds = array<i64: 1, 1, 8>}, {transform_indices = @transform_6, window_bounds = array<i64: 1, 32, 8>}, {transform_indices = @transform_7, window_bounds = array<i64: 1, 1, 8>}, {transform_indices = @transform_8, window_bounds = array<i64: 1, 32, 8>}, {transform_indices = @transform_9, window_bounds = array<i64: 1, 1, 8>}, {transform_indices = @transform_10, window_bounds = array<i64: 1, 8, 32>}, {pipeline_mode = #tpu.pipeline_mode<synchronous>, transform_indices = @transform_11, window_bounds = array<i64: 1, 1, 32>}, {transform_indices = @transform_12, window_bounds = array<i64: 8, 1, 32>}, {transform_indices = @transform_13, window_bounds = array<i64: 8, 1, 1, 8>}]} {
    %c0_i32 = arith.constant 0 : i32
    %0 = arith.cmpi eq, %arg1, %c0_i32 : i32
    %1 = arith.extui %0 : i1 to i32
    %c0_i32_0 = arith.constant 0 : i32
    %2 = arith.cmpi ne, %1, %c0_i32_0 : i32
    scf.if %2 {
      %cst_55 = arith.constant 0.000000e+00 : f32
      %69 = vector.broadcast %cst_55 : f32 to vector<8x1x32xf32>
      %c0_56 = arith.constant 0 : index
      %c0_57 = arith.constant 0 : index
      %c0_58 = arith.constant 0 : index
      %70 = vector.load %arg16[%c0_56, %c0_57, %c0_58] : memref<8x1x32xf32, #tpu.memory_space<vmem>>, vector<8x1x32xf32>
      tpu.vector_store %arg16[%c0_56, %c0_57, %c0_58], %69 {strides = array<i32>} : memref<8x1x32xf32, #tpu.memory_space<vmem>>, vector<8x1x32xf32>,
    } else {
    }
    %c0 = arith.constant 0 : index
    %c0_1 = arith.constant 0 : index
    %c0_2 = arith.constant 0 : index
    %3 = vector.load %arg2[%c0, %c0_1, %c0_2] : memref<8x1x32xf32, #tpu.memory_space<vmem>>, vector<8x1x32xf32>
    %4 = vector.shape_cast %3 : vector<8x1x32xf32> to vector<8x32xf32>
    %c0_3 = arith.constant 0 : index
    %c0_4 = arith.constant 0 : index
    %c0_5 = arith.constant 0 : index
    %5 = vector.load %arg3[%c0_3, %c0_4, %c0_5] : memref<8x8x32xf32, #tpu.memory_space<vmem>>, vector<8x8x32xf32>
    %6 = vector.shape_cast %5 : vector<8x8x32xf32> to vector<64x32xf32>
    %c0_6 = arith.constant 0 : index
    %c0_7 = arith.constant 0 : index
    %c0_8 = arith.constant 0 : index
    %7 = vector.load %arg4[%c0_6, %c0_7, %c0_8] : memref<8x8x32xf32, #tpu.memory_space<vmem>>, vector<8x8x32xf32>
    %8 = vector.shape_cast %7 : vector<8x8x32xf32> to vector<64x32xf32>
    %c0_9 = arith.constant 0 : index
    %c0_10 = arith.constant 0 : index
    %c0_11 = arith.constant 0 : index
    %9 = vector.load %arg6[%c0_9, %c0_10, %c0_11] : memref<1x32x8xf32, #tpu.memory_space<vmem>>, vector<1x32x8xf32>
    %10 = vector.shape_cast %9 : vector<1x32x8xf32> to vector<32x8xf32>
    %c0_12 = arith.constant 0 : index
    %c0_13 = arith.constant 0 : index
    %c0_14 = arith.constant 0 : index
    %11 = vector.load %arg8[%c0_12, %c0_13, %c0_14] : memref<1x32x8xf32, #tpu.memory_space<vmem>>, vector<1x32x8xf32>
    %12 = vector.shape_cast %11 : vector<1x32x8xf32> to vector<32x8xf32>
    %c0_15 = arith.constant 0 : index
    %c0_16 = arith.constant 0 : index
    %c0_17 = arith.constant 0 : index
    %13 = vector.load %arg10[%c0_15, %c0_16, %c0_17] : memref<1x32x8xf32, #tpu.memory_space<vmem>>, vector<1x32x8xf32>
    %14 = vector.shape_cast %13 : vector<1x32x8xf32> to vector<32x8xf32>
    %cst = arith.constant dense<0.000000e+00> : vector<8x8xf32>
    %15 = tpu.matmul %4, %10, %cst {dimension_numbers = #tpu.dot_dimension_numbers<[1], [0], [0], [1], [0, 0, 1, 1], [], []>} : vector<8x32xf32>, vector<32x8xf32>, vector<8x8xf32> -> vector<8x8xf32>
    %c0_18 = arith.constant 0 : index
    %c0_19 = arith.constant 0 : index
    %c0_20 = arith.constant 0 : index
    %16 = vector.load %arg7[%c0_18, %c0_19, %c0_20] : memref<1x1x8xf32, #tpu.memory_space<vmem>>, vector<1x1x8xf32>
    %17 = vector.shape_cast %16 : vector<1x1x8xf32> to vector<1x8xf32>
    %18 = vector.broadcast %17 : vector<1x8xf32> to vector<8x8xf32>
    %19 = arith.addf %15, %18 : vector<8x8xf32>
    %cst_21 = arith.constant dense<0.000000e+00> : vector<64x8xf32>
    %20 = tpu.matmul %6, %12, %cst_21 {dimension_numbers = #tpu.dot_dimension_numbers<[1], [0], [0], [1], [0, 0, 1, 1], [], []>} : vector<64x32xf32>, vector<32x8xf32>, vector<64x8xf32> -> vector<64x8xf32>
    %c0_22 = arith.constant 0 : index
    %c0_23 = arith.constant 0 : index
    %c0_24 = arith.constant 0 : index
    %21 = vector.load %arg9[%c0_22, %c0_23, %c0_24] : memref<1x1x8xf32, #tpu.memory_space<vmem>>, vector<1x1x8xf32>
    %22 = vector.shape_cast %21 : vector<1x1x8xf32> to vector<1x8xf32>
    %23 = vector.broadcast %22 : vector<1x8xf32> to vector<64x8xf32>
    %24 = arith.addf %20, %23 : vector<64x8xf32>
    %cst_25 = arith.constant dense<0.000000e+00> : vector<64x8xf32>
    %25 = tpu.matmul %8, %14, %cst_25 {dimension_numbers = #tpu.dot_dimension_numbers<[1], [0], [0], [1], [0, 0, 1, 1], [], []>} : vector<64x32xf32>, vector<32x8xf32>, vector<64x8xf32> -> vector<64x8xf32>
    %c0_26 = arith.constant 0 : index
    %c0_27 = arith.constant 0 : index
    %c0_28 = arith.constant 0 : index
    %26 = vector.load %arg11[%c0_26, %c0_27, %c0_28] : memref<1x1x8xf32, #tpu.memory_space<vmem>>, vector<1x1x8xf32>
    %27 = vector.shape_cast %26 : vector<1x1x8xf32> to vector<1x8xf32>
    %28 = vector.broadcast %27 : vector<1x8xf32> to vector<64x8xf32>
    %29 = arith.addf %25, %28 : vector<64x8xf32>
    %30 = vector.shape_cast %19 : vector<8x8xf32> to vector<8x1x8xf32>
    %31 = vector.shape_cast %24 : vector<64x8xf32> to vector<8x8x8xf32>
    %32 = vector.shape_cast %29 : vector<64x8xf32> to vector<8x8x8xf32>
    "tpu.trace_start"() <{level = 10 : i32, message = "bqd,bkd->bqk"}> : () -> ()
    %cst_29 = arith.constant dense<0.000000e+00> : vector<8x1x8xf32>
    %33 = tpu.matmul %30, %31, %cst_29 {dimension_numbers = #tpu.dot_dimension_numbers<[2], [2], [1], [1], [0, 0, 0, 1, 1, 1], [0], [0]>} : vector<8x1x8xf32>, vector<8x8x8xf32>, vector<8x1x8xf32> -> vector<8x1x8xf32>
    "tpu.trace_stop"() : () -> ()
    %cst_30 = arith.constant 0.353553385 : f32
    %34 = vector.broadcast %cst_30 : f32 to vector<8x1x8xf32>
    %35 = arith.mulf %33, %34 : vector<8x1x8xf32>
    %36 = math.tanh %35 : vector<8x1x8xf32>
    %cst_31 = arith.constant 1.000000e+01 : f32
    %37 = vector.broadcast %cst_31 : f32 to vector<8x1x8xf32>
    %38 = arith.mulf %36, %37 : vector<8x1x8xf32>
    %c0_32 = arith.constant 0 : index
    %c0_33 = arith.constant 0 : index
    %c0_34 = arith.constant 0 : index
    %39 = vector.load %arg5[%c0_32, %c0_33, %c0_34] : memref<8x1x8xi32, #tpu.memory_space<vmem>>, vector<8x1x8xi32>
    %c0_i32_35 = arith.constant 0 : i32
    %40 = vector.broadcast %c0_i32_35 : i32 to vector<8x1x8xi32>
    %41 = arith.cmpi ne, %39, %40 : vector<8x1x8xi32>
    %cst_36 = arith.constant -1.000000e+01 : f32
    %42 = vector.broadcast %cst_36 : f32 to vector<8x1x8xf32>
    %43 = arith.select %41, %42, %38 : vector<8x1x8xi1>, vector<8x1x8xf32>
    %cst_37 = arith.constant dense<0xFF800000> : vector<8x1xf32>
    %44 = vector.multi_reduction <maximumf>, %43, %cst_37 [2] : vector<8x1x8xf32> to vector<8x1xf32>
    %45 = vector.shape_cast %44 : vector<8x1xf32> to vector<8x1x1xf32>
    %46 = vector.broadcast %45 : vector<8x1x1xf32> to vector<8x1x8xf32>
    %47 = arith.subf %43, %46 : vector<8x1x8xf32>
    %48 = math.exp %47 : vector<8x1x8xf32>
    %cst_38 = arith.constant dense<0.000000e+00> : vector<8x1xf32>
    %49 = vector.multi_reduction <add>, %48, %cst_38 [2] : vector<8x1x8xf32> to vector<8x1xf32>
    %50 = vector.shape_cast %49 : vector<8x1xf32> to vector<8x1x1xf32>
    %51 = math.log %50 : vector<8x1x1xf32>
    %52 = arith.addf %51, %45 : vector<8x1x1xf32>
    %53 = vector.broadcast %52 : vector<8x1x1xf32> to vector<8x1x8xf32>
    %54 = arith.subf %43, %53 : vector<8x1x8xf32>
    %55 = vector.shape_cast %54 : vector<8x1x8xf32> to vector<8x1x1x8xf32>
    %c0_39 = arith.constant 0 : index
    %c0_40 = arith.constant 0 : index
    %c0_41 = arith.constant 0 : index
    %c0_42 = arith.constant 0 : index
    %56 = vector.load %arg15[%c0_39, %c0_40, %c0_41, %c0_42] : memref<8x1x1x8xf32, #tpu.memory_space<vmem>>, vector<8x1x1x8xf32>
    tpu.vector_store %arg15[%c0_39, %c0_40, %c0_41, %c0_42], %55 {strides = array<i32>} : memref<8x1x1x8xf32, #tpu.memory_space<vmem>>, vector<8x1x1x8xf32>,
    "tpu.trace_start"() <{level = 10 : i32, message = "bqk,bkd->bqd"}> : () -> ()
    %cst_43 = arith.constant dense<0.000000e+00> : vector<8x1x8xf32>
    %57 = tpu.matmul %54, %32, %cst_43 {dimension_numbers = #tpu.dot_dimension_numbers<[2], [1], [1], [2], [0, 0, 0, 1, 1, 2], [0], [0]>} : vector<8x1x8xf32>, vector<8x8x8xf32>, vector<8x1x8xf32> -> vector<8x1x8xf32>
    "tpu.trace_stop"() : () -> ()
    %58 = vector.shape_cast %57 : vector<8x1x8xf32> to vector<8x8xf32>
    %c0_44 = arith.constant 0 : index
    %c0_45 = arith.constant 0 : index
    %c0_46 = arith.constant 0 : index
    %59 = vector.load %arg12[%c0_44, %c0_45, %c0_46] : memref<1x8x32xf32, #tpu.memory_space<vmem>>, vector<1x8x32xf32>
    %60 = vector.shape_cast %59 : vector<1x8x32xf32> to vector<8x32xf32>
    %cst_47 = arith.constant dense<0.000000e+00> : vector<8x32xf32>
    %61 = tpu.matmul %58, %60, %cst_47 {dimension_numbers = #tpu.dot_dimension_numbers<[1], [0], [0], [1], [0, 0, 1, 1], [], []>} : vector<8x8xf32>, vector<8x32xf32>, vector<8x32xf32> -> vector<8x32xf32>
    %c0_48 = arith.constant 0 : index
    %c0_49 = arith.constant 0 : index
    %c0_50 = arith.constant 0 : index
    %62 = vector.load %arg16[%c0_48, %c0_49, %c0_50] : memref<8x1x32xf32, #tpu.memory_space<vmem>>, vector<8x1x32xf32>
    %63 = vector.shape_cast %61 : vector<8x32xf32> to vector<8x1x32xf32>
    %64 = arith.addf %62, %63 : vector<8x1x32xf32>
    %c0_51 = arith.constant 0 : index
    %c0_52 = arith.constant 0 : index
    %c0_53 = arith.constant 0 : index
    %65 = vector.load %arg16[%c0_51, %c0_52, %c0_53] : memref<8x1x32xf32, #tpu.memory_space<vmem>>, vector<8x1x32xf32>
    tpu.vector_store %arg16[%c0_51, %c0_52, %c0_53], %64 {strides = array<i32>} : memref<8x1x32xf32, #tpu.memory_space<vmem>>, vector<8x1x32xf32>,
    %c1_i32 = arith.constant 1 : i32
    %66 = arith.cmpi eq, %arg1, %c1_i32 : i32
    %67 = arith.extui %66 : i1 to i32
    %c0_i32_54 = arith.constant 0 : i32
    %68 = arith.cmpi ne, %67, %c0_i32_54 : i32
    scf.if %68 {
      %c0_55 = arith.constant 0 : index
      %c0_56 = arith.constant 0 : index
      %c0_57 = arith.constant 0 : index
      %69 = vector.load %arg16[%c0_55, %c0_56, %c0_57] : memref<8x1x32xf32, #tpu.memory_space<vmem>>, vector<8x1x32xf32>
      %c0_58 = arith.constant 0 : index
      %c0_59 = arith.constant 0 : index
      %c0_60 = arith.constant 0 : index
      %70 = vector.load %arg13[%c0_58, %c0_59, %c0_60] : memref<1x1x32xf32, #tpu.memory_space<vmem>>, vector<1x1x32xf32>
      %71 = vector.broadcast %70 : vector<1x1x32xf32> to vector<8x1x32xf32>
      %72 = arith.addf %69, %71 : vector<8x1x32xf32>
      %c0_61 = arith.constant 0 : index
      %c0_62 = arith.constant 0 : index
      %c0_63 = arith.constant 0 : index
      %73 = vector.load %arg14[%c0_61, %c0_62, %c0_63] : memref<8x1x32xf32, #tpu.memory_space<vmem>>, vector<8x1x32xf32>
      tpu.vector_store %arg14[%c0_61, %c0_62, %c0_63], %72 {strides = array<i32>} : memref<8x1x32xf32, #tpu.memory_space<vmem>>, vector<8x1x32xf32>,
    } else {
    }
    return
  }
  func.func @transform_0(%arg0: i32, %arg1: i32) -> (i32, i32, i32) {
    %c0_i32 = arith.constant 0 : i32
    %c0_i32_0 = arith.constant 0 : i32
    %c0_i32_1 = arith.constant 0 : i32
    return %arg0, %c0_i32, %c0_i32_0 : i32, i32, i32
  }
  func.func @transform_1(%arg0: i32, %arg1: i32) -> (i32, i32, i32) {
    %c0_i32 = arith.constant 0 : i32
    %c0_i32_0 = arith.constant 0 : i32
    %c0_i32_1 = arith.constant 0 : i32
    return %arg0, %c0_i32, %c0_i32_0 : i32, i32, i32
  }
  func.func @transform_2(%arg0: i32, %arg1: i32) -> (i32, i32, i32) {
    %c0_i32 = arith.constant 0 : i32
    %c0_i32_0 = arith.constant 0 : i32
    %c0_i32_1 = arith.constant 0 : i32
    return %arg0, %c0_i32, %c0_i32_0 : i32, i32, i32
  }
  func.func @transform_3(%arg0: i32, %arg1: i32) -> (i32, i32, i32) {
    %c0_i32 = arith.constant 0 : i32
    %c0_i32_0 = arith.constant 0 : i32
    %c0_i32_1 = arith.constant 0 : i32
    return %arg0, %c0_i32, %c0_i32_0 : i32, i32, i32
  }
  func.func @transform_4(%arg0: i32, %arg1: i32) -> (i32, i32, i32) {
    %c0_i32 = arith.constant 0 : i32
    %c0_i32_0 = arith.constant 0 : i32
    %c0_i32_1 = arith.constant 0 : i32
    return %arg1, %c0_i32, %c0_i32_0 : i32, i32, i32
  }
  func.func @transform_5(%arg0: i32, %arg1: i32) -> (i32, i32, i32) {
    %c0_i32 = arith.constant 0 : i32
    %c0_i32_0 = arith.constant 0 : i32
    %c0_i32_1 = arith.constant 0 : i32
    return %arg1, %c0_i32, %c0_i32_0 : i32, i32, i32
  }
  func.func @transform_6(%arg0: i32, %arg1: i32) -> (i32, i32, i32) {
    %c0_i32 = arith.constant 0 : i32
    %c0_i32_0 = arith.constant 0 : i32
    %c0_i32_1 = arith.constant 0 : i32
    return %arg1, %c0_i32, %c0_i32_0 : i32, i32, i32
  }
  func.func @transform_7(%arg0: i32, %arg1: i32) -> (i32, i32, i32) {
    %c0_i32 = arith.constant 0 : i32
    %c0_i32_0 = arith.constant 0 : i32
    %c0_i32_1 = arith.constant 0 : i32
    return %arg1, %c0_i32, %c0_i32_0 : i32, i32, i32
  }
  func.func @transform_8(%arg0: i32, %arg1: i32) -> (i32, i32, i32) {
    %c0_i32 = arith.constant 0 : i32
    %c0_i32_0 = arith.constant 0 : i32
    %c0_i32_1 = arith.constant 0 : i32
    return %arg1, %c0_i32, %c0_i32_0 : i32, i32, i32
  }
  func.func @transform_9(%arg0: i32, %arg1: i32) -> (i32, i32, i32) {
    %c0_i32 = arith.constant 0 : i32
    %c0_i32_0 = arith.constant 0 : i32
    %c0_i32_1 = arith.constant 0 : i32
    return %arg1, %c0_i32, %c0_i32_0 : i32, i32, i32
  }
  func.func @transform_10(%arg0: i32, %arg1: i32) -> (i32, i32, i32) {
    %c0_i32 = arith.constant 0 : i32
    %c0_i32_0 = arith.constant 0 : i32
    %c0_i32_1 = arith.constant 0 : i32
    return %arg1, %c0_i32, %c0_i32_0 : i32, i32, i32
  }
  func.func @transform_11(%arg0: i32, %arg1: i32) -> (i32, i32, i32) {
    %c0_i32 = arith.constant 0 : i32
    %c0_i32_0 = arith.constant 0 : i32
    %c0_i32_1 = arith.constant 0 : i32
    %c0_i32_2 = arith.constant 0 : i32
    return %c0_i32, %c0_i32_0, %c0_i32_1 : i32, i32, i32
  }
  func.func @transform_12(%arg0: i32, %arg1: i32) -> (i32, i32, i32) {
    %c0_i32 = arith.constant 0 : i32
    %c0_i32_0 = arith.constant 0 : i32
    %c0_i32_1 = arith.constant 0 : i32
    return %arg0, %c0_i32, %c0_i32_0 : i32, i32, i32
  }
  func.func @transform_13(%arg0: i32, %arg1: i32) -> (i32, i32, i32, i32) {
    %c0_i32 = arith.constant 0 : i32
    %c0_i32_0 = arith.constant 0 : i32
    %c0_i32_1 = arith.constant 0 : i32
    return %arg0, %arg1, %c0_i32, %c0_i32_0 : i32, i32, i32, i32
  }
}

</mosaic_0001>

<bundles_post_ra>
// kernel: tpu_custom_call.1
= control target key start
LH: loop header
LB: loop body
LE: loop exit
PB: predicated region body
PF: predicated region fallthrough
CT: control target
= control target key end

     0   :  { %s4120_s0 = inlined_call_operand.vmem [shape: f32[8,1,32], index: 0, kind: input, shape index: {}]   ;;  %s4121_s1 = inlined_call_operand.vmem [shape: f32[8,8,32], index: 1, kind: input, shape index: {}]   ;;  %s4122_s2 = inlined_call_operand.vmem [shape: f32[8,8,32], index: 2, kind: input, shape index: {}]   ;;  %s4123_s3 = inlined_call_operand.vmem [shape: s32[8,1,8], index: 3, kind: input, shape index: {}]   ;;  %s4124_s4 = inlined_call_operand.vmem [shape: f32[2,32,8], index: 4, kind: input, shape index: {}]   ;;  %s4125_s5 = inlined_call_operand.vmem [shape: f32[2,1,8], index: 5, kind: input, shape index: {}]   ;;  %s4126_s6 = inlined_call_operand.vmem [shape: f32[2,32,8], index: 6, kind: input, shape index: {}]   ;;  %s4127_s7 = inlined_call_operand.vmem [shape: f32[2,1,8], index: 7, kind: input, shape index: {}]   ;;  %s4128_s8 = inlined_call_operand.vmem [shape: f32[2,32,8], index: 8, kind: input, shape index: {}]   ;;  %s4129_s9 = inlined_call_operand.vmem [shape: f32[2,1,8], index: 9, kind: input, shape index: {}]   ;;  %s4130_s10 = inlined_call_operand.vmem [shape: f32[2,8,32], index: 10, kind: input, shape index: {}]   ;;  %s4131_s11 = inlined_call_operand.vmem [shape: f32[1,1,32], index: 11, kind: input, shape index: {}]   ;;  %s4132_s12 = inlined_call_operand.hbm [shape: f32[8,1,32], index: 12, kind: output, shape index: {0}]   ;;  %s4133_s13 = inlined_call_operand.hbm [shape: f32[8,2,1,8], index: 13, kind: output, shape index: {1}]  }
   0x1   :  { %4149 = sst [smem:[#allocation19_spill]] %s4124_s4 }
   0x2   :  { %4150 = sst [smem:[#allocation20_spill]] %s4131_s11 }
   0x3   :  { %4151 = sst [smem:[#allocation21_spill]] %s4132_s12 }
   0x4   :  { %4152 = sst [smem:[#allocation22_spill]] %s4133_s13 }
   0x5   :  { %19 = vsyncpa [#allocation4], 0 }
   0x6   :  { %20 = vsyncpa [#allocation6], 0 }
   0x7   :  { %22 = vsyncpa [#allocation6 + $0x1], 0  ;;  %s3546_s25 = smov 0   ;;  %s3548_s26 = smov 0  }
   0x8   :  { %s3550_s27 = smov 0   ;;  %s3552_s28 = smov 0  }
   0x9   :  { %s3554_s29 = smov 0   ;;  %s3556_s30 = smov 0  }
   0xa LB: > { %4153 = sst [smem:[#allocation9_spill]] %s3444_s25  ;;  %s2944_s14 = sadd.s32 4294967295, %s3464_s30   ;;  %s3464_s30 = sphi %s3556_s30, %s28_s30   ;;  %s3460_s29 = sphi %s3554_s29, %s4183_s29   ;;  %s3456_s28 = sphi %s3552_s28, %s4182_s28   ;;  %s3452_s27 = sphi %s3550_s27, %s4181_s27   ;;  %s3448_s26 = sphi %s3548_s26, %s4180_s26   ;;  %s3444_s25 = sphi %s3546_s25, %s4179_s25  }
   0xb   : > { %4154 = sst [smem:[#allocation10_spill]] %s3448_s26  ;;  %s2945_s15 = sadd.s32 4294967294, %s3464_s30  }
   0xc   : > { %4155 = sst [smem:[#allocation11_spill]] %s3452_s27  ;;  %s37_s16 = sadd.s32 1, %s3460_s29 }
   0xd   : > { %4156 = sst [smem:[#allocation12_spill]] %s3460_s29  ;;  %s382_s17 = sadd.s32 1, %s3452_s27 }
   0xe   : > { %4157 = sst [smem:[#allocation13_spill]] %s3464_s30  ;;  %p38_p0 = scmp.ge.s32.totalorder %s37_s16, 2 }
   0xf   : > { %p392_p1 = scmp.ne.s32.totalorder %s3452_s27, %s3448_s26  ;;  %p3582_p2 = scmp.eq.s32.totalorder %s2944_s14, 1 }
  0x10   : > { %p398_p3 = scmp.ne.s32.totalorder %s3448_s26, %s3444_s25  ;;  %s4185_s16 = smov (%p38_p0, %s37_s16), 0 }
  0x11   : > { %s4158_s18 = scalar_select %p3582_p2, 1, 0 }
  0x12   : > { %4160 = sst [smem:[#allocation15_spill]] %s4185_s16  ;;  %p3592_p4 = por %p3582_p2, %p392_p1 }
  0x13   : > { %4159 = sst [smem:[#allocation14_spill]] %s4158_s18  ;;  %p399_p5 = scmp.eq.s32.totalorder %s2945_s15, 1 }
  0x14   : > { %s4161_s19 = scalar_select %p3592_p4, 1, 0 }
  0x15   : > { %s378_s20 = ssub.s32 %s3460_s29, %s4185_s16  ;;  %p2952_p6 = scmp.ge.s32.totalorder %s3464_s30, 1 }
  0x16   : > { %4162 = sst [smem:[#allocation16_spill]] %s4161_s19  ;;  %p380_p7 = scmp.eq.s32.totalorder %s378_s20, 0 }
  0x17   : > { %p3599_p8 = por %p399_p5, %p398_p3  ;;  %p503_p9 = scmp.lt.s32.totalorder %s3464_s30, 3 }
  0x18   : > { %s3605_s22 = scalar_select %p380_p7, %s3452_s27, %s382_s17  }
  0x19   : > { %s4163_s21 = scalar_select %p3599_p8, 1, 0 }
  0x1a   : > { %4165 = sst [smem:[#allocation18_spill]] %s3605_s22  ;;  %p504_p10 = pnand %p2952_p6, %p503_p9 }
  0x1b   : > { %4164 = sst [smem:[#allocation17_spill]] %s4163_s21  ;;  %s4139_s23 = sand.u32 (!%p504_p10), 1, %s3448_s26  }
  0x1c   : > { %507 = sbr.rel (%p504_p10) target bundleno = 1348 (0x544), region = 68  ;;  %p610_p11 = scmp.lt.s32.totalorder (!%p504_p10), %s3456_s28, 1 }
  0x1d   : > { %s2953_s24 = sshll.u32 (!%p504_p10), %s4139_s23, 3  ;;  %s4166_s4 = sld [smem:[#allocation19_spill]] (!%p504_p10) }
  0x1e   : > { %s3646_s25 = scalar_lea.vmem (!%p504_p10), [#allocation5], %s2953_s24  ;;  %p2961_p12 = scmp.ne.s32.totalorder (!%p504_p10), %s3456_s28, 0 }
  0x23   : > { %s3612_s14 = scalar_select %p610_p11, %s3456_s28, 1 }
  0x24   : > { %643 = sbr.rel (%p2961_p12) target bundleno = 43 (0x2b), region = 72  ;;  %vm644_vm0 = vcmask (!%p2961_p12), 253952   ;;  %v3466_v0 = vmov (!%p2961_p12), 0.0  }
  0x25   : > { %s3014_s15 = sshll.u32 %s3612_s14, 5  ;;  %s625_s19 = scalar_lea.vmem %s4127_s7, %s3612_s14  ;;  %645 = vst.msk [vmem:[#allocation2] sm:$0x1] (!%p2961_p12), %vm644_vm0, %v3466_v0  ;;  %646 = vst.msk [vmem:[#allocation2 + $0x1] sm:$0x1] (!%p2961_p12), %vm644_vm0, %v3466_v0 }
  0x26   : > { %s3622_s27 = scalar_lea.vmem %s4166_s4, %s3014_s15  ;;  %s622_s23 = scalar_lea.vmem %s4126_s6, %s3014_s15  ;;  %647 = vst.msk [vmem:[#allocation2 + $0x2] sm:$0x1] (!%p2961_p12), %vm644_vm0, %v3466_v0  ;;  %648 = vst.msk [vmem:[#allocation2 + $0x3] sm:$0x1] (!%p2961_p12), %vm644_vm0, %v3466_v0 }
  0x27   : > { %s3634_s18 = scalar_lea.vmem %s4128_s8, %s3014_s15  ;;  %s633_s16 = scalar_lea.vmem %s4129_s9, %s3612_s14  ;;  %649 = vst.msk [vmem:[#allocation2 + $0x4] sm:$0x1] (!%p2961_p12), %vm644_vm0, %v3466_v0  ;;  %650 = vst.msk [vmem:[#allocation2 + $0x5] sm:$0x1] (!%p2961_p12), %vm644_vm0, %v3466_v0 }
  0x28   : > { %s2960_s29 = sshll.u32 %s3612_s14, 3  ;;  %651 = vst.msk [vmem:[#allocation2 + $0x6] sm:$0x1] (!%p2961_p12), %vm644_vm0, %v3466_v0  ;;  %652 = vst.msk [vmem:[#allocation2 + $0x7] sm:$0x1] (!%p2961_p12), %vm644_vm0, %v3466_v0 }
  0x29   : > { %s3644_s11 = scalar_lea.vmem %s4130_s10, %s2960_s29 }
  0x2b PF: > { %v681_v1 = vld [vmem:[%s622_s23] sm:$0xff]  ;;  %v682_v2 = vld [vmem:[%s622_s23 + $0x8] sm:$0xff]  ;;  %v683_v3 = vld [vmem:[%s622_s23 + $0x10] sm:$0xff]  ;;  %vm753_vm1 = vcmask 261120   ;;  %v711_v4 = vlaneseq  ;;  %v3467_v6 = vmov 0.0|0.0   ;;  %vm3468_vm2 = vmmov 0   ;;  %s4167_s15 = scalar_lea.vmem %s4125_s5, %s3612_s14 }
  0x2c   : > { %v3222_v5 = vpack.c.bf16 %v682_v2, %v681_v1  ;;  %3216 = vmatprep.subr.bf16.mxu0 %v3467_v6  ;;  %v684_v7 = vld [vmem:[%s622_s23 + $0x18] sm:$0xff]  ;;  %v677_v8 = vld [vmem:[%s3622_s27] sm:$0xff]  ;;  %v678_v9 = vld [vmem:[%s3622_s27 + $0x8] sm:$0xff]  ;;  %v3469_v14 = vmov 0.0   ;;  %v3470_v15 = vmov 1966171168  }
  0x2d   : > { %v3226_v10 = vpack.c.bf16 %v684_v7, %v683_v3  ;;  %v3217_v11 = vpack.c.bf16 %v678_v9, %v677_v8  ;;  %v661_v12 = vld [vmem:[%s4121_s1] sm:$0xff]  ;;  %v679_v13 = vld [vmem:[%s3622_s27 + $0x10] sm:$0xff]  ;;  %3088 = vmatprep.mubr.msk.f32.mxu0 %vm3468_vm2, %v3469_v14  ;;  %v709_v16 = vunpack.c.l.s4 %v3470_v15  ;;  %v712_v17 = vshrl.u32 %v711_v4, 7  ;;  %v680_v18 = vld [vmem:[%s3622_s27 + $0x18] sm:$0xff]  ;;  %p3007_p13 = scmp.ne.s32.totalorder %s3456_s28, 1 }
  0x2e   : > { %3223 = vmatprep.subr.bf16.mxu1 %v3222_v5  ;;  %3099 = vmatprep.mubr.msk.f32.mxu1 %vm753_vm1, %v661_v12  ;;  %v653_v19 = vld [vmem:[%s4120_s0] sm:$0x1]  ;;  %v3220_v20 = vpack.c.bf16 %v680_v18, %v679_v13  ;;  %v654_v21 = vld [vmem:[%s4120_s0 + $0x1] sm:$0x1]  ;;  %v655_v22 = vld [vmem:[%s4120_s0 + $0x2] sm:$0x1] }
  0x2f   : > { %3225 = vmatpush3.bf16.msra.mxu1 %v3222_v5  ;;  %3218 = vmatpush3.bf16.msra.mxu0 %v3217_v11  ;;  %v656_v23 = vld [vmem:[%s4120_s0 + $0x3] sm:$0x1]  ;;  %v710_v24 = vunpack.c.0.s8 %v709_v16  ;;  %v657_v25 = vld [vmem:[%s4120_s0 + $0x4] sm:$0x1]  ;;  %v658_v26 = vld [vmem:[%s4120_s0 + $0x5] sm:$0x1]  ;;  %v704_v28 = vcombine.low %v653_v19, %v654_v21 }
  0x30   : > { %3227 = vmatprep.subr.bf16.mxu1 %v3226_v10  ;;  %3219 = vmatprep.subr.bf16.mxu0 %v3467_v6  ;;  %v659_v27 = vld [vmem:[%s4120_s0 + $0x6] sm:$0x1]  ;;  %v705_v29 = vcombine.low %v655_v22, %v656_v23  ;;  %v660_v30 = vld [vmem:[%s4120_s0 + $0x7] sm:$0x1]  ;;  %v706_v31 = vcombine.low %v657_v25, %v658_v26  ;;  %v662_v34 = vld [vmem:[%s4121_s1 + $0x8] sm:$0xff]  ;;  %vm1148_vm3 = vcmask 64512  }
  0x31   : > { %v3683_v32 = vsub.s32 %v710_v24, %v712_v17  ;;  %v707_v33 = vcombine.low %v659_v27, %v660_v30  ;;  %v685_v38 = vld [vmem:[%s3634_s18] sm:$0xff]  ;;  %v686_v39 = vld [vmem:[%s3634_s18 + $0x8] sm:$0xff]  ;;  %v663_v40 = vld [vmem:[%s4121_s1 + $0x10] sm:$0xff]  ;;  %vm1797_vm5 = vcmask 57344   ;;  %vm2504_vm13 = vcmask 1041409   ;;  %s4168_s17 = sld [smem:[#allocation20_spill]] (!%p3007_p13) }
  0x32   : > { %v3230_v42 = vpack.c.bf16 %v686_v39, %v685_v38  ;;  %v664_v46 = vld [vmem:[%s4121_s1 + $0x18] sm:$0xff]  ;;  %v687_v47 = vld [vmem:[%s3634_s18 + $0x10] sm:$0xff]  ;;  %v665_v50 = vld [vmem:[%s4121_s1 + $0x20] sm:$0xff]  ;;  %vm2507_vm14 = vcmask 1042434   ;;  %vm2510_vm15 = vcmask 1043459   ;;  %vm2513_vm0 = vcmask 1044484  }
  0x33   : > { %3229 = vmatpush3.bf16.msra.mxu1 %v3226_v10  ;;  %3221 = vmatpush3.bf16.msra.mxu0 %v3220_v20  ;;  %v714_v35 = vrot.slane %v704_v28, %v3683_v32  ;;  %v721_v36 = vrot.slane %v705_v29, %v3683_v32  ;;  %v728_v37 = vrot.slane %v706_v31, %v3683_v32  ;;  %v688_v48 = vld [vmem:[%s3634_s18 + $0x18] sm:$0xff]  ;;  %v669_v53 = vld [vmem:[%s4122_s2] sm:$0xff]  ;;  %v666_v54 = vld [vmem:[%s4121_s1 + $0x28] sm:$0xff] }
  0x34   : > { %v735_v41 = vrot.slane %v707_v33, %v3683_v32  ;;  %3131 = vmatprep.subr.mxu1 %v3469_v14  ;;  %3231 = vmatprep.subr.bf16.mxu0 %v3230_v42  ;;  %v3234_v52 = vpack.c.bf16 %v688_v48, %v687_v47  ;;  %v667_v55 = vld [vmem:[%s4121_s1 + $0x30] sm:$0xff]  ;;  %v668_v56 = vld [vmem:[%s4121_s1 + $0x38] sm:$0xff]  ;;  %v670_v57 = vld [vmem:[%s4122_s2 + $0x8] sm:$0xff] }
  0x35   : > { %v736_v43 = vcombine.low %v714_v35, %v721_v36  ;;  %v671_v58 = vld [vmem:[%s4122_s2 + $0x10] sm:$0xff]  ;;  %v672_v59 = vld [vmem:[%s4122_s2 + $0x18] sm:$0xff]  ;;  %v673_v60 = vld [vmem:[%s4122_s2 + $0x20] sm:$0xff] }
  0x36   : > { %3100 = vmatmul.mubr.msk.f32.vlgmr.msra.gmra.mrb[0].mxu1 %vm753_vm1, %v662_v34  ;;  %v737_v44 = vcombine.low %v728_v37, %v735_v41  ;;  %v674_v61 = vld [vmem:[%s4122_s2 + $0x28] sm:$0xff]  ;;  %v675_v62 = vld [vmem:[%s4122_s2 + $0x30] sm:$0xff]  ;;  %v676_v63 = vld [vmem:[%s4122_s2 + $0x38] sm:$0xff] }
  0x37   : > { %3102 = vmatprep.mubr.msk.f32.mxu1 %vm753_vm1, %v663_v40  ;;  %v744_v45 = vrot.slane %v736_v43, %v3683_v32  ;;  %v2964_v0 = vld [vmem:[%s625_s19] ss:$0 sm:$0xff] }
  0x38   : > { %v751_v49 = vrot.slane %v737_v44, %v3683_v32  ;;  %v2962_v4 = vld [vmem:[%s4167_s15] ss:$0 sm:$0xff] }
  0x39   : > { %v3797_v30 = vld [vmem:[%s633_s16] ss:$0 sm:$0xff] }
  0x3a   : > { %v752_v51 = vcombine.low %v744_v45, %v751_v49  ;;  %3103 = vmatmul.mubr.msk.f32.gmra.mrb[2].mxu1 %vm753_vm1, %v664_v46 }
  0x3b   : > { %3105 = vmatprep.mubr.msk.f32.mxu1 %vm753_vm1, %v665_v50 }
  0x3c   : > { %3089 = vmatmul.mubr.msk.f32.vlgmr.msra.gmra.mrb[0].mxu0 %vm753_vm1, %v752_v51 }
  0x3d   : > { %3233 = vmatpush3.bf16.msra.mxu0 %v3230_v42  ;;  %3119 = vmatprep.mubr.msk.f32.mxu0 %vm753_vm1, %v669_v53 }
  0x3e   : > { %3106 = vmatmul.mubr.msk.f32.gmra.mrb[4].mxu1 %vm753_vm1, %v666_v54  ;;  %3235 = vmatprep.subr.bf16.mxu0 %v3234_v52 }
  0x3f   : > { %3108 = vmatprep.mubr.msk.f32.mxu1 %vm753_vm1, %v667_v55 }
  0x41   : > { %3237 = vmatpush3.bf16.msra.mxu0 %v3234_v52 }
  0x42   : > { %3109 = vmatmul.mubr.msk.f32.gmra.mrb[6].mxu1 %vm753_vm1, %v668_v56  ;;  %3141 = vmatprep.subr.mxu0 %v3469_v14 }
  0x43   : > { %3133 = vmatprep.mubr.msk.f32.mxu1 %vm3468_vm2, %v3469_v14 }
  0x44   : > { %3120 = vmatmul.mubr.msk.f32.vlgmr.msra.gmra.mrb[2].mxu0 %vm753_vm1, %v670_v57 }
  0x45   : > { %3122 = vmatprep.mubr.msk.f32.mxu0 %vm753_vm1, %v671_v58 }
  0x48   : > { %3123 = vmatmul.mubr.msk.f32.gmra.mrb[4].mxu0 %vm753_vm1, %v672_v59 }
  0x49   : > { %3125 = vmatprep.mubr.msk.f32.mxu0 %vm753_vm1, %v673_v60 }
  0x4c   : > { %3126 = vmatmul.mubr.msk.f32.gmra.mrb[6].mxu0 %vm753_vm1, %v674_v61 }
  0x4d   : > { %3128 = vmatprep.mubr.msk.f32.mxu0 %vm753_vm1, %v675_v62 }
  0x50   : > { %3129 = vmatmul.mubr.msk.f32.gmra.mrb[8].mxu0 %vm753_vm1, %v676_v63  ;;  %v1773_v63 = vld [vmem:[%s4123_s3] sm:$0x1]  ;;  %vm2516_vm1 = vcmask 1045509  }
  0x51   : > { %3143 = vmatprep.mubr.msk.f32.mxu0 %vm3468_vm2, %v3469_v14  ;;  %vm1781_vm4 = vcmp.ne.s32.totalorder %v1773_v63, 0 }
 0x109   : > { %v3101_v1 = vpop.f32.mrb[0].mxu1 }
 0x10a   : > { %v923_v2 = vpop.f32.mrb[1].mxu1  ;;  %v929_v18 = vadd.f32 %v3101_v1, %v2964_v0 }
 0x10b   : > { %v924_v3 = vadd.f32 %v2964_v0, %v923_v2 }
 0x10d   : > { %v3104_v5 = vpop.f32.mrb[2].mxu1  ;;  %3132 = vmatpush3.xpose.msk.msra.mxu1 %vm1148_vm3, %v924_v3  ;;  %v1775_v3 = vld [vmem:[%s4123_s3 + $0x2] sm:$0x1] }
 0x10e   : > { %v933_v6 = vpop.f32.mrb[3].mxu1  ;;  %3136 = vmatprep.subr.mxu1 %v3469_v14  ;;  %v939_v27 = vadd.f32 %v3104_v5, %v2964_v0  ;;  %vm1783_vm6 = vcmp.ne.s32.totalorder %v1775_v3, 0 }
 0x10f   : > { %v822_v7 = vpop.f32.mrb[0].mxu0  ;;  %v934_v8 = vadd.f32 %v2964_v0, %v933_v6 }
 0x110   : > { %v823_v9 = vadd.f32 %v2962_v4, %v822_v7  ;;  %v3090_v10 = vpop.f32.mrb[1].mxu0 }
 0x111   : > { %3142 = vmatpush3.xpose.msk.msra.mxu0 %vm1148_vm3, %v934_v8  ;;  %v3107_v11 = vpop.f32.mrb[4].mxu1  ;;  %v1774_v8 = vld [vmem:[%s4123_s3 + $0x1] sm:$0x1] }
 0x112   : > { %v1099_v12 = vcombine.high %v823_v9, %v823_v9  ;;  %v1106_v13 = vrot.slane %v823_v9, %v3683_v32  ;;  %v943_v15 = vpop.f32.mrb[5].mxu1  ;;  %3151 = vmatprep.subr.mxu0 %v3469_v14  ;;  %v949_v31 = vadd.f32 %v3107_v11, %v2964_v0  ;;  %vm1782_vm7 = vcmp.ne.s32.totalorder %v1774_v8, 0 }
 0x113   : > { %v944_v19 = vadd.f32 %v2964_v0, %v943_v15 }
 0x114   : > { %v1114_v16 = vcombine.high %v1106_v13, %v1106_v13  ;;  %v1122_v17 = vrot.slane %v1106_v13, %v3683_v32  ;;  %v1113_v21 = vrot.slane %v1099_v12, %v3683_v32  ;;  %v1777_v13 = vld [vmem:[%s4123_s3 + $0x4] sm:$0x1] }
 0x115   : > { %v3110_v20 = vpop.f32.mrb[6].mxu1  ;;  %vm1785_vm8 = vcmp.ne.s32.totalorder %v1777_v13, 0 }
 0x116   : > { %v1144_v22 = vcombine.high %v1122_v17, %v1122_v17  ;;  %3134 = vmatmul.mubr.msk.f32.vlgmr.msra.gmra.mrb[8].mxu1 %vm1148_vm3, %v1122_v17  ;;  %v953_v23 = vpop.f32.mrb[7].mxu1  ;;  %v1136_v25 = vrot.slane %v1114_v16, %v3683_v32  ;;  %v1129_v29 = vrot.slane %v1113_v21, %v3683_v32  ;;  %v1115_v33 = vcombine.high %v1113_v21, %v1113_v21  ;;  %v1776_v21 = vld [vmem:[%s4123_s3 + $0x3] sm:$0x1] }
 0x117   : > { %3137 = vmatpush3.xpose.msk.msra.mxu1 %vm1148_vm3, %v929_v18  ;;  %3138 = vmatprep.mubr.msk.f32.mxu1 %vm3468_vm2, %v3469_v14  ;;  %v3121_v24 = vpop.f32.mrb[2].mxu0  ;;  %v954_v28 = vadd.f32 %v2964_v0, %v953_v23  ;;  %v959_v37 = vadd.f32 %v3110_v20, %v2964_v0  ;;  %vm1784_vm9 = vcmp.ne.s32.totalorder %v1776_v21, 0 }
 0x118   : > { %3144 = vmatmul.mubr.msk.f32.vlgmr.msra.gmra.mrb[10].mxu0 %vm1148_vm3, %v1144_v22  ;;  %3146 = vmatprep.subr.mxu1 %v3469_v14  ;;  %v1059_v26 = vpop.f32.mrb[3].mxu0  ;;  %v1146_v34 = vcombine.high %v1136_v25, %v1136_v25  ;;  %v1145_v36 = vcombine.high %v1129_v29, %v1129_v29  ;;  %v1143_v38 = vrot.slane %v1115_v33, %v3683_v32  ;;  %v1778_v33 = vld [vmem:[%s4123_s3 + $0x5] sm:$0x1] }
 0x119   : > { %3152 = vmatpush3.xpose.msk.msra.mxu0 %vm1148_vm3, %v944_v19  ;;  %3153 = vmatprep.mubr.msk.f32.mxu0 %vm3468_vm2, %v3469_v14  ;;  %v1060_v35 = vadd.f32 %v3797_v30, %v1059_v26  ;;  %v1065_v39 = vadd.f32 %v3121_v24, %v3797_v30  ;;  %v1779_v26 = vld [vmem:[%s4123_s3 + $0x6] sm:$0x1]  ;;  %vm1786_vm11 = vcmp.ne.s32.totalorder %v1778_v33, 0 }
 0x11a   : > { %3139 = vmatmul.mubr.msk.f32.vlgmr.msra.gmra.mrb[10].mxu1 %vm1148_vm3, %v1136_v25  ;;  %3161 = vmatprep.subr.mxu0 %v3469_v14  ;;  %v1147_v40 = vcombine.high %v1143_v38, %v1143_v38  ;;  %vm1787_vm10 = vcmp.ne.s32.totalorder %v1779_v26, 0 }
 0x11b   : > { %3147 = vmatpush3.xpose.msk.msra.mxu1 %vm1148_vm3, %v939_v27  ;;  %3148 = vmatprep.mubr.msk.f32.mxu1 %vm3468_vm2, %v3469_v14  ;;  %v3829_v41 = vpop.f32.mrb[4].mxu0 }
 0x11c   : > { %3154 = vmatmul.mubr.msk.f32.vlgmr.msra.gmra.mrb[12].mxu0 %vm1148_vm3, %v1129_v29  ;;  %3156 = vmatprep.subr.mxu1 %v3469_v14  ;;  %v3831_v42 = vpop.f32.mrb[5].mxu0 }
 0x11d   : > { %3162 = vmatpush3.xpose.msk.msra.mxu0 %vm1148_vm3, %v954_v28  ;;  %3163 = vmatprep.mubr.msk.f32.mxu0 %vm3468_vm2, %v3469_v14 }
 0x11e   : > { %3149 = vmatmul.mubr.msk.f32.vlgmr.msra.gmra.mrb[12].mxu1 %vm1148_vm3, %v1146_v34  ;;  %3171 = vmatprep.subr.mxu0 %v3469_v14 }
 0x11f   : > { %3157 = vmatpush3.xpose.msk.msra.mxu1 %vm1148_vm3, %v949_v31  ;;  %3158 = vmatprep.mubr.msk.f32.mxu1 %vm3468_vm2, %v3469_v14  ;;  %v3833_v43 = vpop.f32.mrb[6].mxu0 }
 0x120   : > { %3164 = vmatmul.mubr.msk.f32.vlgmr.msra.gmra.mrb[14].mxu0 %vm1148_vm3, %v1145_v36  ;;  %3166 = vmatprep.subr.mxu1 %v3469_v14  ;;  %v3835_v44 = vpop.f32.mrb[7].mxu0 }
 0x121   : > { %3172 = vmatpush3.msra.mxu0 %v1060_v35  ;;  %3173 = vmatprep.mubr.msk.f32.mxu0 %vm3468_vm2, %v3469_v14 }
 0x122   : > { %3159 = vmatmul.mubr.msk.f32.vlgmr.msra.gmra.mrb[14].mxu1 %vm1148_vm3, %v1143_v38  ;;  %3181 = vmatprep.subr.mxu0 %v3469_v14 }
 0x123   : > { %3167 = vmatpush3.xpose.msk.msra.mxu1 %vm1148_vm3, %v959_v37  ;;  %3168 = vmatprep.mubr.msk.f32.mxu1 %vm3468_vm2, %v3469_v14  ;;  %v3837_v45 = vpop.f32.mrb[8].mxu0 }
 0x124   : > { %3176 = vmatprep.subr.mxu1 %v3469_v14  ;;  %v3839_v46 = vpop.f32.mrb[9].mxu0 }
 0x126   : > { %3169 = vmatmul.mubr.msk.f32.vlgmr.msra.gmra.mrb[16].mxu1 %vm1148_vm3, %v1147_v40 }
 0x127   : > { %3177 = vmatpush3.msra.mxu1 %v1065_v39  ;;  %3178 = vmatprep.mubr.msk.f32.mxu1 %vm3468_vm2, %v3469_v14 }
 0x128   : > { %3186 = vmatprep.subr.mxu1 %v3469_v14 }
 0x1e9   : > { %v1220_v47 = vpop.f32.mrb[8].mxu1 }
 0x1ea   : > { %v1749_v48 = vmul.f32 0.35355338, %v1220_v47  ;;  %v3135_v49 = vpop.f32.mrb[9].mxu1 }
 0x1eb   : > { %v1370_v50 = vpop.f32.mrb[10].mxu0 }
 0x1ec   : > { %3308 = vtanh.f32 %v1749_v48  ;;  %v1751_v51 = vmul.f32 0.35355338, %v1370_v50  ;;  %v3145_v52 = vpop.f32.mrb[11].mxu0  ;;  %v1780_v48 = vld [vmem:[%s4123_s3 + $0x7] sm:$0x1] }
 0x1ed   : > { %v1295_v53 = vpop.f32.mrb[10].mxu1  ;;  %vm1788_vm12 = vcmp.ne.s32.totalorder %v1780_v48, 0 }
 0x1ee   : > { %3310 = vtanh.f32 %v1751_v51  ;;  %v1750_v54 = vmul.f32 0.35355338, %v1295_v53  ;;  %v3140_v55 = vpop.f32.mrb[11].mxu1 }
 0x1ef   : > { %v1520_v56 = vpop.f32.mrb[12].mxu0 }
 0x1f0   : > { %3312 = vtanh.f32 %v1750_v54  ;;  %v1753_v57 = vmul.f32 0.35355338, %v1520_v56  ;;  %v3155_v58 = vpop.f32.mrb[13].mxu0 }
 0x1f1   : > { %v1445_v59 = vpop.f32.mrb[12].mxu1 }
 0x1f2   : > { %v1752_v60 = vmul.f32 0.35355338, %v1445_v59  ;;  %3314 = vtanh.f32 %v1753_v57  ;;  %v3150_v61 = vpop.f32.mrb[13].mxu1 }
 0x1f3   : > { %v1670_v62 = vpop.f32.mrb[14].mxu0 }
 0x1f4   : > { %3316 = vtanh.f32 %v1752_v60  ;;  %v1755_v0 = vmul.f32 0.35355338, %v1670_v62  ;;  %v3165_v1 = vpop.f32.mrb[15].mxu0 }
 0x1f5   : > { %v1595_v2 = vpop.f32.mrb[14].mxu1 }
 0x1f6   : > { %v3309_v4 = vpop.eup %3308  ;;  %v1754_v5 = vmul.f32 0.35355338, %v1595_v2  ;;  %3318 = vtanh.f32 %v1755_v0  ;;  %v3160_v6 = vpop.f32.mrb[15].mxu1 }
 0x1f7   : > { %v1765_v7 = vmul.f32 10.0, %v3309_v4 }
 0x1f8   : > { %v3311_v9 = vpop.eup %3310  ;;  %3320 = vtanh.f32 %v1754_v5 }
 0x1f9   : > { %v1767_v10 = vmul.f32 10.0, %v3311_v9  ;;  %v1745_v11 = vpop.f32.mrb[16].mxu1  ;;  %v3850_v12 = vsel %vm1781_vm4, -10.0, %v1765_v7  ;;  %vm2522_vm4 = vcmask 1047559  }
 0x1fa   : > { %v3313_v15 = vpop.eup %3312  ;;  %v1756_v16 = vmul.f32 0.35355338, %v1745_v11  ;;  %v3170_v17 = vpop.f32.mrb[17].mxu1  ;;  %v1798_v18 = vsel %vm1797_vm5, %v3850_v12, -inf }
 0x1fb   : > { %v1766_v19 = vmul.f32 10.0, %v3313_v15  ;;  %1799 = vmax.xlane.f32.xlu0 %v1798_v18  ;;  %v3857_v20 = vsel %vm1783_vm6, -10.0, %v1767_v10 }
 0x1fc   : > { %v3315_v22 = vpop.eup %3314  ;;  %3322 = vtanh.f32 %v1756_v16  ;;  %v1804_v23 = vsel %vm1797_vm5, %v3857_v20, -inf }
 0x1fd   : > { %v1769_v24 = vmul.f32 10.0, %v3315_v22  ;;  %1805 = vmax.xlane.f32.xlu1 %v1804_v23  ;;  %v3864_v25 = vsel %vm1782_vm7, -10.0, %v1766_v19 }
 0x1fe   : > { %v3317_v27 = vpop.eup %3316  ;;  %v1801_v28 = vsel %vm1797_vm5, %v3864_v25, -inf }
 0x1ff   : > { %v1768_v29 = vmul.f32 10.0, %v3317_v27  ;;  %1802 = vmax.xlane.f32.xlu0 %v1801_v28  ;;  %v3871_v31 = vsel %vm1785_vm8, -10.0, %v1769_v24 }
 0x200   : > { %v3319_v34 = vpop.eup %3318  ;;  %v1810_v39 = vsel %vm1797_vm5, %v3871_v31, -inf }
 0x201   : > { %v1771_v35 = vmul.f32 10.0, %v3319_v34  ;;  %v3876_v36 = vsel %vm1784_vm9, -10.0, %v1768_v29 }
 0x202   : > { %v3321_v37 = vpop.eup %3320  ;;  %v1807_v38 = vsel %vm1797_vm5, %v3876_v36, -inf }
 0x203   : > { %v1770_v40 = vmul.f32 10.0, %v3321_v37  ;;  %1808 = vmax.xlane.f32.xlu1 %v1807_v38  ;;  %1811 = vmax.xlane.f32.xlu0 %v1810_v39  ;;  %v3882_v47 = vsel %vm1787_vm10, -10.0, %v1771_v35 }
 0x204   : > { %v1816_v52 = vsel %vm1797_vm5, %v3882_v47, -inf }
 0x205   : > { %v3887_v49 = vsel %vm1786_vm11, -10.0, %v1770_v40 }
 0x206   : > { %v3323_v50 = vpop.eup %3322  ;;  %v1813_v51 = vsel %vm1797_vm5, %v3887_v49, -inf }
 0x207   : > { %v1772_v53 = vmul.f32 10.0, %v3323_v50  ;;  %1814 = vmax.xlane.f32.xlu1 %v1813_v51  ;;  %1817 = vmax.xlane.f32.xlu0 %v1816_v52 }
 0x209   : > { %v3893_v54 = vsel %vm1788_vm12, -10.0, %v1772_v53 }
 0x20a   : > { %v1819_v55 = vsel %vm1797_vm5, %v3893_v54, -inf }
 0x20b   : > { %1820 = vmax.xlane.f32.xlu1 %v1819_v55 }
 0x288   : > { %v3897_v56 = vpop.xlane.xlu0 %1799 }
 0x289   : > { %v1822_v57 = vsub.f32 %v3850_v12, %v3897_v56 }
 0x28a   : > { %v3901_v58 = vpop.xlane.xlu1 %1805 }
 0x28b   : > { %v1830_v59 = vmul.f32 1.442695, %v1822_v57  ;;  %v1824_v60 = vsub.f32 %v3857_v20, %v3901_v58 }
 0x28c   : > { %v3905_v61 = vpop.xlane.xlu0 %1802 }
 0x28d   : > { %3324 = vpow2.f32 %v1830_v59  ;;  %v1834_v62 = vmul.f32 1.442695, %v1824_v60  ;;  %v1823_v63 = vsub.f32 %v3864_v25, %v3905_v61 }
 0x28f   : > { %3326 = vpow2.f32 %v1834_v62  ;;  %v1832_v0 = vmul.f32 1.442695, %v1823_v63 }
 0x290   : > { %v3909_v1 = vpop.xlane.xlu1 %1808  ;;  %v3911_v2 = vpop.xlane.xlu0 %1811 }
 0x291   : > { %3328 = vpow2.f32 %v1832_v0  ;;  %v1825_v3 = vsub.f32 %v3876_v36, %v3909_v1  ;;  %v1826_v4 = vsub.f32 %v3871_v31, %v3911_v2 }
 0x293   : > { %v1836_v5 = vmul.f32 1.442695, %v1825_v3  ;;  %v1838_v6 = vmul.f32 1.442695, %v1826_v4 }
 0x294   : > { %v3917_v7 = vpop.xlane.xlu1 %1814  ;;  %v3919_v8 = vpop.xlane.xlu0 %1817 }
 0x295   : > { %3330 = vpow2.f32 %v1836_v5  ;;  %v1827_v9 = vsub.f32 %v3887_v49, %v3917_v7  ;;  %v1828_v10 = vsub.f32 %v3882_v47, %v3919_v8  ;;  %v1070_v5 = vadd.f32 %v3797_v30, %v3831_v42 }
 0x296   : > { %3332 = vpow2.f32 %v1838_v6 }
 0x297   : > { %v3325_v11 = vpop.eup %3324  ;;  %v1840_v13 = vmul.f32 1.442695, %v1827_v9  ;;  %v1842_v15 = vmul.f32 1.442695, %v1828_v10 }
 0x298   : > { %v3925_v16 = vpop.xlane.xlu1 %1820  ;;  %v1846_v17 = vsel %vm1797_vm5, %v3325_v11, 0.0 }
 0x299   : > { %v3327_v18 = vpop.eup %3326  ;;  %3334 = vpow2.f32 %v1840_v13  ;;  %v1829_v19 = vsub.f32 %v3893_v54, %v3925_v16  ;;  %1847 = vadd.xlane.f32.xlu0 %v1846_v17  ;;  %v1075_v13 = vadd.f32 %v3829_v41, %v3797_v30  ;;  %v1080_v17 = vadd.f32 %v3797_v30, %v3835_v44 }
 0x29a   : > { %3336 = vpow2.f32 %v1842_v15  ;;  %v1852_v24 = vsel %vm1797_vm5, %v3327_v18, 0.0 }
 0x29b   : > { %v3329_v21 = vpop.eup %3328  ;;  %v1844_v22 = vmul.f32 1.442695, %v1829_v19 }
 0x29c   : > { %v1849_v23 = vsel %vm1797_vm5, %v3329_v21, 0.0 }
 0x29d   : > { %3338 = vpow2.f32 %v1844_v22  ;;  %1850 = vadd.xlane.f32.xlu1 %v1849_v23  ;;  %1853 = vadd.xlane.f32.xlu0 %v1852_v24 }
 0x29f   : > { %v3331_v26 = vpop.eup %3330 }
 0x2a0   : > { %v3333_v27 = vpop.eup %3332  ;;  %v1855_v28 = vsel %vm1797_vm5, %v3331_v26, 0.0 }
 0x2a1   : > { %1856 = vadd.xlane.f32.xlu1 %v1855_v28  ;;  %v1858_v29 = vsel %vm1797_vm5, %v3333_v27, 0.0 }
 0x2a2   : > { %1859 = vadd.xlane.f32.xlu0 %v1858_v29 }
 0x2a3   : > { %v3335_v33 = vpop.eup %3334 }
 0x2a4   : > { %v3337_v34 = vpop.eup %3336  ;;  %v1861_v35 = vsel %vm1797_vm5, %v3335_v33, 0.0 }
 0x2a5   : > { %1862 = vadd.xlane.f32.xlu1 %v1861_v35  ;;  %v1864_v37 = vsel %vm1797_vm5, %v3337_v34, 0.0 }
 0x2a6   : > { %1865 = vadd.xlane.f32.xlu0 %v1864_v37 }
 0x2a7   : > { %v3339_v38 = vpop.eup %3338 }
 0x2a8   : > { %v1867_v39 = vsel %vm1797_vm5, %v3339_v38, 0.0 }
 0x2a9   : > { %1868 = vadd.xlane.f32.xlu1 %v1867_v39 }
 0x326   : > { %v1848_v40 = vpop.xlane.xlu0 %1847 }
 0x327   : > { %3340 = vlog2.f32 %v1848_v40 }
 0x32a   : > { %v1851_v48 = vpop.xlane.xlu1 %1850  ;;  %v1854_v50 = vpop.xlane.xlu0 %1853 }
 0x32b   : > { %3342 = vlog2.f32 %v1851_v48 }
 0x32c   : > { %3344 = vlog2.f32 %v1854_v50 }
 0x32e   : > { %v1857_v51 = vpop.xlane.xlu1 %1856 }
 0x32f   : > { %3346 = vlog2.f32 %v1857_v51  ;;  %v1860_v52 = vpop.xlane.xlu0 %1859 }
 0x330   : > { %3348 = vlog2.f32 %v1860_v52 }
 0x331   : > { %v3341_v53 = vpop.eup %3340 }
 0x332   : > { %v1871_v55 = vmul.f32 0.6931472, %v3341_v53  ;;  %v1863_v57 = vpop.xlane.xlu1 %1862 }
 0x333   : > { %3350 = vlog2.f32 %v1863_v57  ;;  %v1866_v59 = vpop.xlane.xlu0 %1865 }
 0x334   : > { %v1886_v60 = vadd.f32 %v1871_v55, %v3897_v56  ;;  %3352 = vlog2.f32 %v1866_v59 }
 0x335   : > { %v3343_v62 = vpop.eup %3342 }
 0x336   : > { %v3345_v63 = vpop.eup %3344  ;;  %v1894_v0 = vsub.f32 %v3850_v12, %v1886_v60  ;;  %v1873_v3 = vmul.f32 0.6931472, %v3343_v62  ;;  %v1869_v4 = vpop.xlane.xlu1 %1868 }
 0x337   : > { %v1875_v6 = vmul.f32 0.6931472, %v3345_v63  ;;  %3354 = vlog2.f32 %v1869_v4 }
 0x338   : > { %1902 = vst.msk [vmem:[%s3646_s25] sm:$0x1] %vm1797_vm5, %v1894_v0  ;;  %v1887_v9 = vadd.f32 %v1873_v3, %v3905_v61  ;;  %3174 = vmatmul.mubr.msk.f32.vlgmr.msra.gmra.mrb[16].mxu0 %vm1148_vm3, %v1894_v0 }
 0x339   : > { %v3347_v56 = vpop.eup %3346  ;;  %v1888_v10 = vadd.f32 %v1875_v6, %v3901_v58  ;;  %3182 = vmatpush3.msra.mxu0 %v1070_v5  ;;  %3183 = vmatprep.mubr.msk.f32.mxu0 %vm3468_vm2, %v3469_v14 }
 0x33a   : > { %v3349_v12 = vpop.eup %3348  ;;  %v1895_v42 = vsub.f32 %v3864_v25, %v1887_v9  ;;  %v1877_v11 = vmul.f32 0.6931472, %v3347_v56  ;;  %3191 = vmatprep.subr.mxu0 %v3469_v14  ;;  %v2596_v56 = vld [vmem:[#allocation2] sm:$0x1] }
 0x33b   : > { %v1896_v61 = vsub.f32 %v3857_v20, %v1888_v10  ;;  %v1879_v15 = vmul.f32 0.6931472, %v3349_v12 }
 0x33c   : > { %1903 = vst.msk [vmem:[%s3646_s25 + $0x1] sm:$0x1] %vm1797_vm5, %v1895_v42  ;;  %v1889_v58 = vadd.f32 %v1877_v11, %v3909_v1  ;;  %3179 = vmatmul.mubr.msk.f32.vlgmr.msra.gmra.mrb[18].mxu1 %vm1148_vm3, %v1895_v42  ;;  %v1085_v1 = vadd.f32 %v3833_v43, %v3797_v30  ;;  %v2597_v11 = vld [vmem:[#allocation2 + $0x1] sm:$0x1] }
 0x33d   : > { %v3351_v18 = vpop.eup %3350  ;;  %1904 = vst.msk [vmem:[%s3646_s25 + $0x2] sm:$0x1] %vm1797_vm5, %v1896_v61  ;;  %v1890_v25 = vadd.f32 %v1879_v15, %v3911_v2  ;;  %3184 = vmatmul.mubr.msk.f32.vlgmr.msra.gmra.mrb[18].mxu0 %vm1148_vm3, %v1896_v61  ;;  %3187 = vmatpush3.msra.mxu1 %v1075_v13  ;;  %v1090_v2 = vadd.f32 %v3797_v30, %v3839_v46  ;;  %v2598_v13 = vld [vmem:[#allocation2 + $0x2] sm:$0x1]  ;;  %v2600_v61 = vld [vmem:[#allocation2 + $0x4] sm:$0x1] }
 0x33e   : > { %v3353_v41 = vpop.eup %3352  ;;  %v1897_v20 = vsub.f32 %v3876_v36, %v1889_v58  ;;  %v1881_v44 = vmul.f32 0.6931472, %v3351_v18  ;;  %3192 = vmatpush3.msra.mxu0 %v1080_v17  ;;  %3188 = vmatprep.mubr.msk.f32.mxu1 %vm3468_vm2, %v3469_v14 }
 0x33f   : > { %v1898_v19 = vsub.f32 %v3871_v31, %v1890_v25  ;;  %v1883_v21 = vmul.f32 0.6931472, %v3353_v41  ;;  %3193 = vmatprep.mubr.msk.f32.mxu0 %vm3468_vm2, %v3469_v14  ;;  %3196 = vmatprep.subr.mxu1 %v3469_v14  ;;  %v2599_v25 = vld [vmem:[#allocation2 + $0x3] sm:$0x1]  ;;  %v2601_v41 = vld [vmem:[#allocation2 + $0x5] sm:$0x1] }
 0x340   : > { %1905 = vst.msk [vmem:[%s3646_s25 + $0x3] sm:$0x1] %vm1797_vm5, %v1897_v20  ;;  %v1891_v36 = vadd.f32 %v1881_v44, %v3917_v7  ;;  %3201 = vmatprep.subr.mxu0 %v3469_v14  ;;  %3189 = vmatmul.mubr.msk.f32.vlgmr.msra.gmra.mrb[20].mxu1 %vm1148_vm3, %v1897_v20  ;;  %v1095_v7 = vadd.f32 %v3837_v45, %v3797_v30  ;;  %v2494_v45 = vld [vmem:[%s3644_s11] sm:$0xff] }
 0x341   : > { %v3355_v43 = vpop.eup %3354  ;;  %1906 = vst.msk [vmem:[%s3646_s25 + $0x4] sm:$0x1] %vm1797_vm5, %v1898_v19  ;;  %v1892_v31 = vadd.f32 %v1883_v21, %v3919_v8  ;;  %3194 = vmatmul.mubr.msk.f32.vlgmr.msra.gmra.mrb[20].mxu0 %vm1148_vm3, %v1898_v19  ;;  %3197 = vmatpush3.msra.mxu1 %v1085_v1  ;;  %v2602_v20 = vld [vmem:[#allocation2 + $0x6] sm:$0x1] }
 0x342   : > { %v1899_v46 = vsub.f32 %v3887_v49, %v1891_v36  ;;  %v1885_v22 = vmul.f32 0.6931472, %v3355_v43  ;;  %3202 = vmatpush3.msra.mxu0 %v1090_v2  ;;  %3198 = vmatprep.mubr.msk.f32.mxu1 %vm3468_vm2, %v3469_v14  ;;  %v2603_v36 = vld [vmem:[#allocation2 + $0x7] sm:$0x1] }
 0x343   : > { %v1900_v23 = vsub.f32 %v3882_v47, %v1892_v31  ;;  %3203 = vmatprep.mubr.msk.f32.mxu0 %vm3468_vm2, %v3469_v14  ;;  %3206 = vmatprep.subr.mxu1 %v3469_v14 }
 0x344   : > { %1907 = vst.msk [vmem:[%s3646_s25 + $0x5] sm:$0x1] %vm1797_vm5, %v1899_v46  ;;  %v1893_v49 = vadd.f32 %v1885_v22, %v3925_v16  ;;  %3199 = vmatmul.mubr.msk.f32.vlgmr.msra.gmra.mrb[22].mxu1 %vm1148_vm3, %v1899_v46  ;;  %3211 = vmatprep.subr.mxu0 %v3469_v14 }
 0x345   : > { %1908 = vst.msk [vmem:[%s3646_s25 + $0x6] sm:$0x1] %vm1797_vm5, %v1900_v23  ;;  %3204 = vmatmul.mubr.msk.f32.vlgmr.msra.gmra.mrb[22].mxu0 %vm1148_vm3, %v1900_v23  ;;  %3207 = vmatpush3.msra.mxu1 %v1095_v7 }
 0x346   : > { %v1901_v30 = vsub.f32 %v3893_v54, %v1893_v49  ;;  %3208 = vmatprep.mubr.msk.f32.mxu1 %vm3468_vm2, %v3469_v14  ;;  %3213 = vmatprep.mubr.msk.f32.mxu0 %vm3468_vm2, %v3469_v14  ;;  %vm2519_vm2 = vcmask 1046534  }
 0x347   : > { %3212 = vmatpush3.msra.mxu0 %v2494_v45 }
 0x348   : > { %1909 = vst.msk [vmem:[%s3646_s25 + $0x7] sm:$0x1] %vm1797_vm5, %v1901_v30  ;;  %3209 = vmatmul.mubr.msk.f32.vlgmr.msra.gmra.mrb[24].mxu1 %vm1148_vm3, %v1901_v30  ;;  %vm2670_vm5 = vcmask 253952   ;;  %v2691_v30 = vld [vmem:[%s4168_s17] sm:$0x1] (!%p3007_p13) }
 0x40b   : > { %v1979_v47 = vpop.f32.mrb[16].mxu0 }
 0x40c   : > { %v3175_v8 = vpop.f32.mrb[17].mxu0 }
 0x40f   : > { %v2052_v16 = vpop.f32.mrb[18].mxu1 }
 0x410   : > { %v2503_v24 = vrot.slane %v2052_v16, 7  ;;  %v2125_v26 = vpop.f32.mrb[18].mxu0  ;;  %v3180_v54 = vpop.f32.mrb[19].mxu1 }
 0x411   : > { %v2506_v27 = vrot.slane %v2125_v26, 6  ;;  %v3185_v28 = vpop.f32.mrb[19].mxu0 }
 0x412   : > { %v2505_v29 = vsel %vm2504_vm13, %v2503_v24, %v1979_v47 }
 0x413   : > { %v2508_v33 = vsel %vm2507_vm14, %v2506_v27, %v2505_v29  ;;  %v2198_v34 = vpop.f32.mrb[20].mxu1 }
 0x414   : > { %v2509_v14 = vrot.slane %v2198_v34, 5  ;;  %v2271_v35 = vpop.f32.mrb[20].mxu0  ;;  %v3190_v37 = vpop.f32.mrb[21].mxu1 }
 0x415   : > { %v2512_v38 = vrot.slane %v2271_v35, 4  ;;  %v3195_v39 = vpop.f32.mrb[21].mxu0 }
 0x416   : > { %v2511_v40 = vsel %vm2510_vm15, %v2509_v14, %v2508_v33 }
 0x417   : > { %v2514_v48 = vsel %vm2513_vm0, %v2512_v38, %v2511_v40  ;;  %v2344_v50 = vpop.f32.mrb[22].mxu1 }
 0x418   : > { %v2515_v51 = vrot.slane %v2344_v50, 3  ;;  %v2417_v52 = vpop.f32.mrb[22].mxu0  ;;  %v3200_v53 = vpop.f32.mrb[23].mxu1 }
 0x419   : > { %v2518_v55 = vrot.slane %v2417_v52, 2  ;;  %v3205_v57 = vpop.f32.mrb[23].mxu0 }
 0x41a   : > { %v2517_v59 = vsel %vm2516_vm1, %v2515_v51, %v2514_v48 }
 0x41b   : > { %v2520_v60 = vsel %vm2519_vm2, %v2518_v55, %v2517_v59  ;;  %v2490_v62 = vpop.f32.mrb[24].mxu1 }
 0x41c   : > { %v2521_v63 = vrot.slane %v2490_v62, 1  ;;  %v3210_v0 = vpop.f32.mrb[25].mxu1 }
 0x41e   : > { %v2523_v3 = vsel %vm2522_vm4, %v2521_v63, %v2520_v60 }
 0x41f   : > { %3214 = vmatmul.mubr.msk.f32.vlgmr.msra.gmra.mrb[24].mxu0 %vm1148_vm3, %v2523_v3 }
 0x4f2   : > { %v2592_v4 = vpop.f32.mrb[24].mxu0 }
 0x4f3   : > { %v2605_v5 = vcombine.high %v2592_v4, %v2592_v4  ;;  %v2612_v6 = vrot.slane %v2592_v4, %v3683_v32  ;;  %v3215_v9 = vpop.f32.mrb[25].mxu0 }
 0x4f5   : > { %v2619_v10 = vrot.slane %v2605_v5, %v3683_v32  ;;  %v2620_v12 = vcombine.high %v2612_v6, %v2612_v6  ;;  %v2628_v42 = vrot.slane %v2612_v6, %v3683_v32 }
 0x4f7   : > { %v2621_v15 = vcombine.high %v2619_v10, %v2619_v10  ;;  %v2635_v17 = vrot.slane %v2619_v10, %v3683_v32  ;;  %v2642_v58 = vrot.slane %v2620_v12, %v3683_v32  ;;  %v2650_v18 = vcombine.high %v2628_v42, %v2628_v42 }
 0x4f8   : > { %v2662_v44 = vadd.f32 %v2628_v42, %v2596_v56 }
 0x4f9   : > { %v2649_v1 = vrot.slane %v2621_v15, %v3683_v32  ;;  %v2651_v19 = vcombine.high %v2635_v17, %v2635_v17  ;;  %v2652_v21 = vcombine.high %v2642_v58, %v2642_v58  ;;  %v2663_v2 = vadd.f32 %v2642_v58, %v2597_v11  ;;  %2682 = sbr.rel (%p3007_p13) target bundleno = 1290 (0x50a), region = 76 }
 0x4fa   : > { %v2664_v43 = vadd.f32 %v2650_v18, %v2598_v13  ;;  %v2666_v31 = vadd.f32 %v2635_v17, %v2600_v61  ;;  %2671 = vst.msk [vmem:[#allocation2] sm:$0x1] %vm2670_vm5, %v2662_v44 }
 0x4fb   : > { %v2653_v46 = vcombine.high %v2649_v1, %v2649_v1  ;;  %v2665_v22 = vadd.f32 %v2652_v21, %v2599_v25  ;;  %v2667_v7 = vadd.f32 %v2649_v1, %v2601_v41  ;;  %v2668_v23 = vadd.f32 %v2651_v19, %v2602_v20  ;;  %2672 = vst.msk [vmem:[#allocation2 + $0x1] sm:$0x1] %vm2670_vm5, %v2663_v2 }
 0x4fc   : > { %2673 = vst.msk [vmem:[#allocation2 + $0x2] sm:$0x1] %vm2670_vm5, %v2664_v43  ;;  %2675 = vst.msk [vmem:[#allocation2 + $0x4] sm:$0x1] %vm2670_vm5, %v2666_v31 }
 0x4fd   : > { %v2669_v49 = vadd.f32 %v2653_v46, %v2603_v36  ;;  %2674 = vst.msk [vmem:[#allocation2 + $0x3] sm:$0x1] %vm2670_vm5, %v2665_v22  ;;  %2676 = vst.msk [vmem:[#allocation2 + $0x5] sm:$0x1] %vm2670_vm5, %v2667_v7 }
 0x4fe   : > { %2677 = vst.msk [vmem:[#allocation2 + $0x6] sm:$0x1] %vm2670_vm5, %v2668_v23 }
 0x4ff   : > { %2678 = vst.msk [vmem:[#allocation2 + $0x7] sm:$0x1] %vm2670_vm5, %v2669_v49 }
 0x501   : > { %v2683_v32 = vld [vmem:[#allocation2] sm:$0x1] }
 0x502   : > { %v2684_v45 = vld [vmem:[#allocation2 + $0x1] sm:$0x1]  ;;  %v2692_v47 = vadd.f32 %v2691_v30, %v2683_v32 }
 0x503   : > { %v2693_v8 = vadd.f32 %v2691_v30, %v2684_v45  ;;  %v2685_v16 = vld [vmem:[#allocation2 + $0x2] sm:$0x1]  ;;  %v2687_v26 = vld [vmem:[#allocation2 + $0x4] sm:$0x1] }
 0x504   : > { %v2686_v24 = vld [vmem:[#allocation2 + $0x3] sm:$0x1]  ;;  %v2694_v54 = vadd.f32 %v2691_v30, %v2685_v16  ;;  %v2696_v28 = vadd.f32 %v2691_v30, %v2687_v26  ;;  %v2688_v29 = vld [vmem:[#allocation2 + $0x5] sm:$0x1]  ;;  %2700 = vst.msk [vmem:[#allocation3] sm:$0x1] %vm2670_vm5, %v2692_v47 }
 0x505   : > { %v2695_v27 = vadd.f32 %v2691_v30, %v2686_v24  ;;  %v2689_v33 = vld [vmem:[#allocation2 + $0x6] sm:$0x1]  ;;  %2701 = vst.msk [vmem:[#allocation3 + $0x1] sm:$0x1] %vm2670_vm5, %v2693_v8  ;;  %v2697_v14 = vadd.f32 %v2691_v30, %v2688_v29 }
 0x506   : > { %v2690_v34 = vld [vmem:[#allocation2 + $0x7] sm:$0x1]  ;;  %v2698_v35 = vadd.f32 %v2691_v30, %v2689_v33  ;;  %2702 = vst.msk [vmem:[#allocation3 + $0x2] sm:$0x1] %vm2670_vm5, %v2694_v54  ;;  %2704 = vst.msk [vmem:[#allocation3 + $0x4] sm:$0x1] %vm2670_vm5, %v2696_v28 }
 0x507   : > { %v2699_v37 = vadd.f32 %v2691_v30, %v2690_v34  ;;  %2703 = vst.msk [vmem:[#allocation3 + $0x3] sm:$0x1] %vm2670_vm5, %v2695_v27  ;;  %2705 = vst.msk [vmem:[#allocation3 + $0x5] sm:$0x1] %vm2670_vm5, %v2697_v14 }
 0x508   : > { %2706 = vst.msk [vmem:[#allocation3 + $0x6] sm:$0x1] %vm2670_vm5, %v2698_v35 }
 0x509   : > { %2707 = vst.msk [vmem:[#allocation3 + $0x7] sm:$0x1] %vm2670_vm5, %v2699_v37 }
 0x50a PF: > { %s3471_s16 = smov [#allocation3]  }
 0x50b   : > { %s2722_s27 = sshll.u32 %s3471_s16, 4  ;;  %s2723_s27 = int_to_ptr.vmem [resolvable:$true] %s2722_s27 }
 0x50c   : > { %s3356_s20 = scalar_lea.vmem %s2723_s27, 128  ;;  %p3363_p5 = scmp.lt.s32.totalorder %s2723_s27, %s2723_s27 }
 0x50d   : > { %p3357_p0 = scmp.ne.s32.totalorder %s2723_s27, %s3356_s20  ;;  %p3364_p6 = scmp.lt.s32.totalorder %s3356_s20, %s3356_s20 }
 0x50f   : > { %p3358_p1 = pnand %p3357_p0, %p3582_p2  ;;  %p3365_p7 = por %p3364_p6, %p3363_p5 }
 0x511   : > { %p3359_p3 = pneg %p3358_p1 }
 0x513   : > { %p3366_p9 = pnand %p3365_p7, %p3359_p3 }
 0x515   : > { %3369 = shalt.err (!%p3366_p9)
}
 0x516   : > { %s4170_s4 = sld [smem:[#allocation21_spill]] }
 0x51c   : > { %s3370_s12 = scalar_lea.hbm %s4170_s4, 128 }
 0x51d   : > { %p3371_p10 = scmp.ne.s32.totalorder %s4170_s4, %s3370_s12  ;;  %p3376_p13 = scmp.lt.u32.totalorder %s3370_s12, %s4170_s4 }
 0x51f   : > { %p3372_p11 = pnand %p3371_p10, %p3582_p2 }
 0x521   : > { %p3373_p12 = pneg %p3372_p11 }
 0x523   : > { %p3378_p0 = pnand %p3376_p13, %p3373_p12 }
 0x525   : > { %3381 = shalt.err (!%p3378_p0)
}
 0x526   : > { %s3472_s21 = smov 16   ;;  %s4171_s23 = sld [smem:[#allocation10_spill]] }
 0x527   : > { %s3473_s15 = smov 1   ;;  %s3010_s17 = sshll.u32 %s3456_s28, 4 }
 0x528   : > { %3239 = dma.vmem_to_hbm [thread:$0]  (%p3582_p2), %s2723_s27, 128, %s4170_s4, [#allocation4], %s3472_s21, %s3472_s21, %s3473_s15  }
 0x529   : > { %s4173_s29 = sld [smem:[#allocation22_spill]]  ;;  %s2740_s18 = sshll.u32 %s3646_s25, 4  ;;  %s4064_s18 = int_to_ptr.vmem [resolvable:$true] %s2740_s18 }
 0x52a   : > { %s3382_s30 = scalar_lea.vmem %s4064_s18, 128  ;;  %s3474_s28 = smov [#allocation5]  }
 0x52b   : > { %p3383_p1 = scmp.ne.s32.totalorder %s4064_s18, %s3382_s30  ;;  %s3386_s27 = sshll.u32 %s3474_s28, 4  ;;  %s3387_s27 = int_to_ptr.vmem [resolvable:$false] %s3386_s27 }
 0x52c   : > { %s4175_s13 = sand.u32 1, %s4171_s23   ;;  %s3388_s11 = scalar_lea.vmem %s3387_s27, 256 }
 0x52d   : > { %s4068_s26 = scalar_lea.sflag [#allocation6], %s4175_s13  ;;  %p3384_p3 = pnand %p3383_p1, %p3592_p4 }
 0x52e   : > { %p3389_p6 = scmp.lt.s32.totalorder %s4064_s18, %s3387_s27  ;;  %p3390_p7 = scmp.lt.s32.totalorder %s3388_s11, %s3382_s30 }
 0x52f   : > { %s4174_s22 = smov %s4173_s29  ;;  %s4061_s12 = scalar_lea.hbm %s4173_s29, %s3010_s17 }
 0x530   : > { %p3385_p5 = pneg %p3384_p3  ;;  %p3391_p9 = por %p3390_p7, %p3389_p6 }
 0x532   : > { %p3392_p10 = pnand %p3391_p9, %p3385_p5 }
 0x534   : > { %3395 = shalt.err (!%p3392_p10)
}
 0x535   : > { %s3396_s25 = scalar_lea.hbm %s4061_s12, 128  ;;  %s3400_s17 = scalar_lea.hbm %s4174_s22, 256 }
 0x536   : > { %p3397_p11 = scmp.ne.s32.totalorder %s4061_s12, %s3396_s25  ;;  %p3401_p0 = scmp.lt.u32.totalorder %s4061_s12, %s4174_s22 }
 0x537   : > { %p3402_p1 = scmp.lt.u32.totalorder %s3400_s17, %s3396_s25  ;;  %p3404_p5 = scmp.lt.u32.totalorder %s3396_s25, %s4061_s12 }
 0x538   : > { %p3398_p12 = pnand %p3397_p11, %p3592_p4 }
 0x539   : > { %p3403_p3 = por %p3402_p1, %p3401_p0 }
 0x53a   : > { %p3399_p13 = pneg %p3398_p12 }
 0x53b   : > { %p3405_p6 = por %p3404_p5, %p3403_p3 }
 0x53d   : > { %p3406_p7 = pnand %p3405_p6, %p3399_p13 }
 0x53f   : > { %3409 = shalt.err (!%p3406_p7)
}
 0x540   : > { %s3475_s29 = smov 32  }
 0x541   : > { %3240 = dma.vmem_to_hbm [thread:$0]  (%p3592_p4), %s4064_s18, 128, %s4061_s12, %s4068_s26, %s3472_s21, %s3475_s29, %s3473_s15  }
 0x542   : > { %3435 = dma.done.wait (%p3582_p2), [#allocation4], 128  }
 0x543   : > { %3437 = vsyncadd (%p3582_p2), [#allocation4], 4294967168 }
 0x544 PF: > { %s4176_s13 = sld [smem:[#allocation13_spill]]  ;;  %s4177_s30 = sld [smem:[#allocation9_spill]] }
 0x54a   : > { %p3250_p9 = scmp.ge.s32.totalorder %s4176_s13, 2  ;;  %s2759_s27 = sand.u32 1, %s4177_s30  }
 0x54b   : > { %s2760_s24 = scalar_lea.sflag [#allocation6], %s2759_s27 }
 0x54c   : > { %p3245_p10 = pnand %p3250_p9, %p3599_p8 }
 0x54e   : > { %3439 = dma.done.wait (!%p3245_p10), %s2760_s24, 128  }
 0x54f   : > { %3441 = vsyncadd (!%p3245_p10), %s2760_s24, 4294967168  ;;  %s28_s30 = sadd.s32 1, %s4176_s13   ;;  %s4179_s25 = sld [smem:[#allocation10_spill]] }
 0x550   : > { %p25_p11 = scmp.ge.s32.totalorder %s28_s30, 4   ;;  %s4180_s26 = sld [smem:[#allocation11_spill]] }
 0x551   : > { %s4181_s27 = sld [smem:[#allocation18_spill]]  ;;  %s4182_s28 = sld [smem:[#allocation12_spill]] }
 0x552   : > { %s4183_s29 = sld [smem:[#allocation15_spill]]  ;;  %27 = sbr.rel (!%p25_p11) target bundleno = 10 (0xa), region = 151 }
 0x559   :  { %2765 = vsyncpa [#allocation4], 1 }
 0x55a   :  { %2767 = vsyncpa [#allocation4 + $0x1], 1 }
 0x55b   :  { %2768 = vsyncpa [#allocation6], 1 }
 0x55c   :  { %2770 = vsyncpa [#allocation6 + $0x1], 1 }

</bundles_post_ra>
